<compile_context>
chip_gen: v7x
topology: tpu7x:2x2x1
jax: 0.10.0
libtpu: 0.0.40
codegen_flags: <defaults>
</compile_context>

<pallas_src>
import jax
import jax.numpy as jnp
from jax.experimental import pallas as pl
from jax.experimental.pallas import tpu as pltpu

IN_DIM = 1000
HID_DIM = 512
OUT_DIM = 21
N_PAD = 128          # lane-dense output block; real columns are [:, :21]
TB_CAP = 512         # max batch tile (rows); multiple of 16
TARGET_STEPS = 4     # aim for >= 2 grid steps per TensorCore on v7x


def _mlp_kernel(x_ref, w1_ref, b1_ref, w2_ref, b2_ref, o_ref):
    # Cast activations to bf16 in-kernel (VPU) so the wrapper never touches x.
    x = x_ref[...].astype(jnp.bfloat16)
    # Linear(1000 -> 512) on the MXU: bf16 operands, f32 accumulation.
    h = jnp.dot(x, w1_ref[...], preferred_element_type=jnp.float32)
    # Bias add + ReLU in f32; b1 is (1, 512) and broadcasts per grid step.
    h = jnp.maximum(h + b1_ref[...], 0.0)
    # TODO(synk): Dropout(0.5) is treated as identity (PyTorch eval()/inference
    # semantics); training-mode masking would need pltpu.prng_seed/random_bits.
    # Linear(512 -> 128-padded): cast activations to bf16 for the dot only.
    z = jnp.dot(h.astype(jnp.bfloat16), w2_ref[...],
                preferred_element_type=jnp.float32)
    z = z + b2_ref[...]
    # bf16 store halves output HBM traffic; sigmoid in (0,1) so loss ~2e-3 abs.
    o_ref[...] = jax.nn.sigmoid(z).astype(o_ref.dtype)


def _pad_axis(a, axis, target):
    pad = target - a.shape[axis]
    if pad <= 0:
        return a
    widths = [(0, 0)] * a.ndim
    widths[axis] = (0, pad)
    return jnp.pad(a, widths)


def prepare_params(w1, b1, w2, b2):
    """One-time cast/pad of [in, out]-layout params for the kernel."""
    w1p = w1.astype(jnp.bfloat16)                                          # (1000, 512)
    b1p = b1.reshape(1, HID_DIM).astype(jnp.float32)                       # (1, 512)
    w2p = _pad_axis(w2, 1, N_PAD).astype(jnp.bfloat16)                     # (512, 128)
    b2p = _pad_axis(b2.reshape(1, OUT_DIM), 1, N_PAD).astype(jnp.float32)  # (1, 128)
    return w1p, b1p, w2p, b2p


def _choose_tb(B):
    """Batch tile: multiple of 16, >= TARGET_STEPS grid steps, capped at TB_CAP."""
    tb = -(-B // TARGET_STEPS)              # cdiv(B, TARGET_STEPS)
    tb = ((tb + 15) // 16) * 16             # multiple of 16 (bf16 sublane pack)
    return max(16, min(tb, TB_CAP))


@jax.jit
def id_class_forward(x, w1p, b1p, w2p, b2p):
    """y = sigmoid(relu(x @ W1 + b1) @ W2 + b2); x: (B, 1000) f32 -> (B, 21) f32."""
    B = x.shape[0]
    TB = _choose_tb(B)
    grid = (pl.cdiv(B, TB),)

    cost = pl.CostEstimate(
        flops=2 * B * (IN_DIM * HID_DIM + HID_DIM * N_PAD),
        transcendentals=B * N_PAD,
        bytes_accessed=(x.size * 4 + w1p.size * 2 + w2p.size * 2
                        + b1p.size * 4 + b2p.size * 4 + B * N_PAD * 2),
    )

    out = pl.pallas_call(
        _mlp_kernel,
        out_shape=jax.ShapeDtypeStruct((B, N_PAD), jnp.bfloat16),
        grid_spec=pltpu.PrefetchScalarGridSpec(
            num_scalar_prefetch=0,
            grid=grid,
            in_specs=[
                pl.BlockSpec((TB, IN_DIM), lambda i: (i, 0)),       # x: tiled over batch
                pl.BlockSpec((IN_DIM, HID_DIM), lambda i: (0, 0)),  # w1: resident
                pl.BlockSpec((1, HID_DIM), lambda i: (0, 0)),       # b1: resident
                pl.BlockSpec((HID_DIM, N_PAD), lambda i: (0, 0)),   # w2: resident
                pl.BlockSpec((1, N_PAD), lambda i: (0, 0)),         # b2: resident
            ],
            out_specs=pl.BlockSpec((TB, N_PAD), lambda i: (i, 0)),
        ),
        compiler_params=pltpu.CompilerParams(
            dimension_semantics=("parallel",)),
        cost_estimate=cost,
    )(x, w1p, b1p, w2p, b2p)

    return out[:, :OUT_DIM].astype(jnp.float32)


def init_params(key):
    """PyTorch nn.Linear default init, stored as [in, out]."""
    k1, k2, k3, k4 = jax.random.split(key, 4)
    lim1 = 1.0 / (IN_DIM ** 0.5)
    lim2 = 1.0 / (HID_DIM ** 0.5)
    w1 = jax.random.uniform(k1, (IN_DIM, HID_DIM), jnp.float32, -lim1, lim1)
    b1 = jax.random.uniform(k2, (HID_DIM,), jnp.float32, -lim1, lim1)
    w2 = jax.random.uniform(k3, (HID_DIM, OUT_DIM), jnp.float32, -lim2, lim2)
    b2 = jax.random.uniform(k4, (OUT_DIM,), jnp.float32, -lim2, lim2)
    return w1, b1, w2, b2


def _ref_bf16(x, w1p, b1p, w2p, b2p):
    """Reference with identical bf16 casting (tight tolerance)."""
    xb = x.astype(jnp.bfloat16)
    h = jnp.maximum(jnp.dot(xb, w1p, preferred_element_type=jnp.float32) + b1p, 0.0)
    z = jnp.dot(h.astype(jnp.bfloat16), w2p, preferred_element_type=jnp.float32) + b2p
    return jax.nn.sigmoid(z)[:, :OUT_DIM].astype(jnp.float32)


if __name__ == "__main__":
    key = jax.random.PRNGKey(0)
    kx, kp = jax.random.split(key)
    w1, b1, w2, b2 = init_params(kp)
    w1p, b1p, w2p, b2p = prepare_params(w1, b1, w2, b2)

    # Main test: B = 64 -> TB = 16, grid = (4,) (multi-step, megacore-shardable).
    B = 64
    x = jax.random.normal(kx, (B, IN_DIM), jnp.float32)
    out = jax.block_until_ready(id_class_forward(x, w1p, b1p, w2p, b2p))
    assert out.shape == (B, OUT_DIM)

    ref_b = _ref_bf16(x, w1p, b1p, w2p, b2p)
    assert jnp.allclose(out, ref_b, atol=1e-2, rtol=1e-2)

    ref_f32 = jax.nn.sigmoid(jnp.maximum(x @ w1 + b1, 0.0) @ w2 + b2)
    assert jnp.allclose(out, ref_f32, atol=3e-2, rtol=3e-2)

    # Secondary test: uneven batch (B = 10) exercises boundary-block clipping.
    B2 = 10
    x2 = jax.random.normal(jax.random.PRNGKey(1), (B2, IN_DIM), jnp.float32)
    out2 = jax.block_until_ready(id_class_forward(x2, w1p, b1p, w2p, b2p))
    assert out2.shape == (B2, OUT_DIM)
    ref2 = jax.nn.sigmoid(jnp.maximum(x2 @ w1 + b1, 0.0) @ w2 + b2)
    assert jnp.allclose(out2, ref2, atol=3e-2, rtol=3e-2)

    print("KERNEL_OK")
</pallas_src>

<mosaic_0001>
module attributes {stable_mosaic.version = 11 : i64} {
  func.func @_mlp_kernel(%arg0: i32, %arg1: memref<16x1000xf32, #tpu.memory_space<vmem>>, %arg2: memref<1000x512xbf16, #tpu.memory_space<vmem>>, %arg3: memref<1x512xf32, #tpu.memory_space<vmem>>, %arg4: memref<512x128xbf16, #tpu.memory_space<vmem>>, %arg5: memref<1x128xf32, #tpu.memory_space<vmem>>, %arg6: memref<16x128xbf16, #tpu.memory_space<vmem>>) attributes {dimension_semantics = [#tpu.dimension_semantics<parallel>], iteration_bounds = array<i64: 4>, scalar_prefetch = 0 : i64, scratch_operands = 0 : i64, tpu.core_type = #tpu.core_type<tc>, window_params = [{transform_indices = @transform_0, window_bounds = array<i64: 16, 1000>}, {pipeline_mode = #tpu.pipeline_mode<synchronous>, transform_indices = @transform_1, window_bounds = array<i64: 1000, 512>}, {pipeline_mode = #tpu.pipeline_mode<synchronous>, transform_indices = @transform_2, window_bounds = array<i64: 1, 512>}, {pipeline_mode = #tpu.pipeline_mode<synchronous>, transform_indices = @transform_3, window_bounds = array<i64: 512, 128>}, {pipeline_mode = #tpu.pipeline_mode<synchronous>, transform_indices = @transform_4, window_bounds = array<i64: 1, 128>}, {transform_indices = @transform_5, window_bounds = array<i64: 16, 128>}]} {
    %c0 = arith.constant 0 : index
    %c0_0 = arith.constant 0 : index
    %0 = vector.load %arg1[%c0, %c0_0] : memref<16x1000xf32, #tpu.memory_space<vmem>>, vector<16x1000xf32>
    %1 = arith.truncf %0 : vector<16x1000xf32> to vector<16x1000xbf16>
    %c0_1 = arith.constant 0 : index
    %c0_2 = arith.constant 0 : index
    %2 = vector.load %arg2[%c0_1, %c0_2] : memref<1000x512xbf16, #tpu.memory_space<vmem>>, vector<1000x512xbf16>
    %cst = arith.constant dense<0.000000e+00> : vector<16x512xf32>
    %3 = tpu.matmul %1, %2, %cst {dimension_numbers = #tpu.dot_dimension_numbers<[1], [0], [0], [1], [0, 0, 1, 1], [], []>} : vector<16x1000xbf16>, vector<1000x512xbf16>, vector<16x512xf32> -> vector<16x512xf32>
    %c0_3 = arith.constant 0 : index
    %c0_4 = arith.constant 0 : index
    %4 = vector.load %arg3[%c0_3, %c0_4] : memref<1x512xf32, #tpu.memory_space<vmem>>, vector<1x512xf32>
    %5 = vector.broadcast %4 : vector<1x512xf32> to vector<16x512xf32>
    %6 = arith.addf %3, %5 : vector<16x512xf32>
    %cst_5 = arith.constant 0.000000e+00 : f32
    %7 = vector.broadcast %cst_5 : f32 to vector<16x512xf32>
    %8 = arith.maximumf %6, %7 : vector<16x512xf32>
    %9 = arith.truncf %8 : vector<16x512xf32> to vector<16x512xbf16>
    %c0_6 = arith.constant 0 : index
    %c0_7 = arith.constant 0 : index
    %10 = vector.load %arg4[%c0_6, %c0_7] : memref<512x128xbf16, #tpu.memory_space<vmem>>, vector<512x128xbf16>
    %cst_8 = arith.constant dense<0.000000e+00> : vector<16x128xf32>
    %11 = tpu.matmul %9, %10, %cst_8 {dimension_numbers = #tpu.dot_dimension_numbers<[1], [0], [0], [1], [0, 0, 1, 1], [], []>} : vector<16x512xbf16>, vector<512x128xbf16>, vector<16x128xf32> -> vector<16x128xf32>
    %c0_9 = arith.constant 0 : index
    %c0_10 = arith.constant 0 : index
    %12 = vector.load %arg5[%c0_9, %c0_10] : memref<1x128xf32, #tpu.memory_space<vmem>>, vector<1x128xf32>
    %13 = vector.broadcast %12 : vector<1x128xf32> to vector<16x128xf32>
    %14 = arith.addf %11, %13 : vector<16x128xf32>
    %15 = arith.negf %14 : vector<16x128xf32>
    %16 = math.exp %15 : vector<16x128xf32>
    %cst_11 = arith.constant 1.000000e+00 : f32
    %17 = vector.broadcast %cst_11 : f32 to vector<16x128xf32>
    %18 = arith.addf %17, %16 : vector<16x128xf32>
    %19 = arith.divf %17, %18 : vector<16x128xf32>
    %20 = arith.truncf %19 : vector<16x128xf32> to vector<16x128xbf16>
    %c0_12 = arith.constant 0 : index
    %c0_13 = arith.constant 0 : index
    %21 = vector.load %arg6[%c0_12, %c0_13] : memref<16x128xbf16, #tpu.memory_space<vmem>>, vector<16x128xbf16>
    tpu.vector_store %arg6[%c0_12, %c0_13], %20 {strides = array<i32>} : memref<16x128xbf16, #tpu.memory_space<vmem>>, vector<16x128xbf16>,
    return
  }
  func.func @transform_0(%arg0: i32) -> (i32, i32) {
    %c0_i32 = arith.constant 0 : i32
    %c0_i32_0 = arith.constant 0 : i32
    return %arg0, %c0_i32 : i32, i32
  }
  func.func @transform_1(%arg0: i32) -> (i32, i32) {
    %c0_i32 = arith.constant 0 : i32
    %c0_i32_0 = arith.constant 0 : i32
    %c0_i32_1 = arith.constant 0 : i32
    return %c0_i32, %c0_i32_0 : i32, i32
  }
  func.func @transform_2(%arg0: i32) -> (i32, i32) {
    %c0_i32 = arith.constant 0 : i32
    %c0_i32_0 = arith.constant 0 : i32
    %c0_i32_1 = arith.constant 0 : i32
    return %c0_i32, %c0_i32_0 : i32, i32
  }
  func.func @transform_3(%arg0: i32) -> (i32, i32) {
    %c0_i32 = arith.constant 0 : i32
    %c0_i32_0 = arith.constant 0 : i32
    %c0_i32_1 = arith.constant 0 : i32
    return %c0_i32, %c0_i32_0 : i32, i32
  }
  func.func @transform_4(%arg0: i32) -> (i32, i32) {
    %c0_i32 = arith.constant 0 : i32
    %c0_i32_0 = arith.constant 0 : i32
    %c0_i32_1 = arith.constant 0 : i32
    return %c0_i32, %c0_i32_0 : i32, i32
  }
  func.func @transform_5(%arg0: i32) -> (i32, i32) {
    %c0_i32 = arith.constant 0 : i32
    %c0_i32_0 = arith.constant 0 : i32
    return %arg0, %c0_i32 : i32, i32
  }
}

</mosaic_0001>

<bundles_post_ra>
// kernel: id_class_forward.1
= control target key start
LH: loop header
LB: loop body
LE: loop exit
PB: predicated region body
PF: predicated region fallthrough
CT: control target
= control target key end

     0   :  { %10 = vsyncpa [#allocation3], 0  ;;  %s3898_s0 = inlined_call_operand.hbm [shape: f32[64,1000], index: 0, kind: input, shape index: {}]   ;;  %s3899_s1 = inlined_call_operand.hbm [shape: bf16[1000,512], index: 1, kind: input, shape index: {}]   ;;  %s3900_s2 = inlined_call_operand.vmem [shape: f32[1,512], index: 2, kind: input, shape index: {}]   ;;  %s3901_s3 = inlined_call_operand.hbm [shape: bf16[512,128], index: 3, kind: input, shape index: {}]   ;;  %s3902_s4 = inlined_call_operand.vmem [shape: f32[1,128], index: 4, kind: input, shape index: {}]   ;;  %s3903_s5 = inlined_call_operand.vmem [shape: bf16[64,128], index: 5, kind: output, shape index: {}]  }
   0x1   :  { %12 = vsyncpa [#allocation3 + $0x1], 0 }
   0x2   :  { %13 = vsyncpa [#allocation5], 0  ;;  %s3691_s18 = smov 0   ;;  %s3693_s19 = smov 0  }
   0x3   :  { %s3695_s20 = smov 0   ;;  %s3697_s21 = smov 0  }
   0x4 LB: > { %s2650_s22 = sadd.s32 4294967295, %s3651_s21   ;;  %p39_p0 = scmp.ne.s32.totalorder %s3643_s19, %s3639_s18  ;;  %s3651_s21 = sphi %s3697_s21, %s3919_s21   ;;  %s3647_s20 = sphi %s3695_s20, %s3918_s20   ;;  %s3643_s19 = sphi %s3693_s19, %s3917_s19   ;;  %s3639_s18 = sphi %s3691_s18, %s3916_s18  }
   0x5   : > { %p3713_p1 = scmp.eq.s32.totalorder %s2650_s22, 0  ;;  %p2652_p2 = scmp.ge.s32.totalorder %s3651_s21, 1 }
   0x6   : > { %p160_p3 = scmp.lt.s32.totalorder %s3651_s21, 5  ;;  %s3653_s26 = smov [#allocation4]  }
   0x7   : > { %s3908_s23 = scalar_select %p3713_p1, 1, 0 }
   0x8   : > { %p3721_p4 = por %p3713_p1, %p39_p0  ;;  %p3725_p5 = pnand %p2652_p2, %p160_p3 }
   0x9   : > { %s172_s27 = sshll.u32 %s3653_s26, 4  ;;  %s3654_s29 = smov [#allocation6]   ;;  %s173_s27 = int_to_ptr.vmem [resolvable:$true] %s172_s27 }
   0xa   : > { %s3909_s24 = scalar_select %p3721_p4, 1, 0 }
   0xb   : > { %s3910_s25 = scalar_select %p3725_p5, 1, 0 }
   0xc   : > { %p3056_p6 = pneg %p3725_p5  ;;  %s188_s30 = sshll.u32 %s3654_s29, 4  ;;  %s3737_s30 = int_to_ptr.vmem [resolvable:$true] %s188_s30 }
   0xd   : > { %s3527_s8 = scalar_lea.hbm %s3899_s1, 32000 }
   0xe   : > { %p3733_p7 = pnand %p3056_p6, %p3713_p1  ;;  %p3528_p8 = scmp.ne.s32.totalorder %s3899_s1, %s3527_s8 }
   0xf   : > { %p3534_p12 = scmp.lt.u32.totalorder %s3527_s8, %s3899_s1 }
  0x10   : > { %p3529_p9 = pneg %p3733_p7 }
  0x12   : > { %p3530_p10 = pnand %p3529_p9, %p3528_p8 }
  0x14   : > { %p3531_p11 = pneg %p3530_p10 }
  0x16   : > { %p3536_p13 = pnand %p3534_p12, %p3531_p11 }
  0x18   : > { %3539 = shalt.err (!%p3536_p13)
}
  0x19   : > { %s3540_s13 = scalar_lea.vmem %s173_s27, 32000  ;;  %p3548_p6 = scmp.lt.s32.totalorder %s173_s27, %s173_s27 }
  0x1a   : > { %p3541_p0 = scmp.ne.s32.totalorder %s173_s27, %s3540_s13  ;;  %p3549_p1 = scmp.lt.s32.totalorder %s3540_s13, %s3540_s13 }
  0x1c   : > { %p3543_p2 = pnand %p3541_p0, %p3529_p9  ;;  %p3550_p4 = por %p3549_p1, %p3548_p6 }
  0x1e   : > { %p3544_p3 = pneg %p3543_p2 }
  0x20   : > { %p3551_p5 = pnand %p3550_p4, %p3544_p3 }
  0x22   : > { %3554 = shalt.err (!%p3551_p5)
}
  0x23   : > { %s3655_s14 = smov 256   ;;  %s3656_s15 = smov 16  }
  0x24   : > { %3059 = dma.hbm_to_vmem [thread:$0]  (!%p3733_p7), %s3899_s1, 32000, %s173_s27, [#allocation5], %s3655_s14, %s3655_s14, %s3656_s15  }
  0x25   : > { %s3555_s29 = scalar_lea.hbm %s3901_s3, 4096 }
  0x26   : > { %p3556_p8 = scmp.ne.s32.totalorder %s3901_s3, %s3555_s29  ;;  %p3562_p5 = scmp.lt.u32.totalorder %s3555_s29, %s3901_s3 }
  0x28   : > { %p3558_p1 = pnand %p3556_p8, %p3529_p9 }
  0x2a   : > { %p3559_p4 = pneg %p3558_p1 }
  0x2c   : > { %p3564_p10 = pnand %p3562_p5, %p3559_p4 }
  0x2e   : > { %3567 = shalt.err (!%p3564_p10)
}
  0x2f   : > { %s3568_s27 = scalar_lea.vmem %s3737_s30, 4096  ;;  %p3576_p0 = scmp.lt.s32.totalorder %s3737_s30, %s3737_s30 }
  0x30   : > { %p3569_p11 = scmp.ne.s32.totalorder %s3737_s30, %s3568_s27  ;;  %p3577_p2 = scmp.lt.s32.totalorder %s3568_s27, %s3568_s27 }
  0x32   : > { %p3571_p12 = pnand %p3569_p11, %p3529_p9  ;;  %p3578_p3 = por %p3577_p2, %p3576_p0 }
  0x34   : > { %p3572_p13 = pneg %p3571_p12 }
  0x36   : > { %p3579_p6 = pnand %p3578_p3, %p3572_p13 }
  0x38   : > { %3582 = shalt.err (!%p3579_p6)
}
  0x39   : > { %s3657_s10 = smov 64   ;;  %s3658_s11 = smov 4  }
  0x3a   : > { %3062 = dma.hbm_to_vmem [thread:$0]  (!%p3733_p7), %s3901_s3, 4096, %s3737_s30, [#allocation5], %s3657_s10, %s3657_s10, %s3658_s11  }
  0x3b   : > { %s3789_s14 = sadd.s32 1, %s3651_s21   ;;  %s26_s16 = sadd.s32 1, %s3647_s20 }
  0x3c   : > { %s23_s15 = ssub.s32 %s3651_s21, %s3789_s14  ;;  %p33_p8 = scmp.ne.s32.totalorder %s3647_s20, %s3643_s19 }
  0x3d   : > { %p24_p9 = scmp.eq.s32.totalorder %s23_s15, 0  ;;  %p34_p1 = scmp.eq.s32.totalorder %s3651_s21, 0 }
  0x3e   : > { %p3069_p5 = scmp.lt.s32.totalorder %s3651_s21, 4  ;;  %s205_s18 = sand.u32 1, %s3647_s20  }
  0x3f   : > { %s3798_s17 = scalar_select %p24_p9, %s3647_s20, %s26_s16  }
  0x40   : > { %p35_p4 = por %p34_p1, %p33_p8  ;;  %s2962_s28 = sshll.u32 %s3651_s21, 11 }
  0x41   : > { %s2656_s26 = sshll.u32 %s205_s18, 7  ;;  %s3806_s7 = scalar_lea.hbm %s3898_s0, %s2962_s28 }
  0x42   : > { %s209_s30 = scalar_lea.vmem [#allocation2], %s2656_s26  ;;  %p3808_p7 = pnand %p3069_p5, %p35_p4 }
  0x43   : > { %s217_s8 = sshll.u32 %s209_s30, 4  ;;  %s3814_s27 = scalar_lea.sflag [#allocation3], %s205_s18  ;;  %s3812_s8 = int_to_ptr.vmem [resolvable:$true] %s217_s8 }
  0x44   : > { %s3583_s11 = scalar_lea.hbm %s3806_s7, 2048  ;;  %p3585_p11 = pneg %p3808_p7 }
  0x45   : > { %p3584_p10 = scmp.ne.s32.totalorder %s3806_s7, %s3583_s11  ;;  %s3588_s15 = scalar_lea.hbm %s3898_s0, 8192 }
  0x46   : > { %p3589_p0 = scmp.lt.u32.totalorder %s3806_s7, %s3898_s0  ;;  %p3590_p2 = scmp.lt.u32.totalorder %s3588_s15, %s3583_s11 }
  0x47   : > { %p3586_p12 = pnand %p3585_p11, %p3584_p10  ;;  %p3592_p6 = scmp.lt.u32.totalorder %s3583_s11, %s3806_s7 }
  0x48   : > { %p3591_p3 = por %p3590_p2, %p3589_p0 }
  0x49   : > { %p3587_p13 = pneg %p3586_p12 }
  0x4a   : > { %p3593_p9 = por %p3592_p6, %p3591_p3 }
  0x4c   : > { %p3594_p8 = pnand %p3593_p9, %p3587_p13 }
  0x4e   : > { %3597 = shalt.err (!%p3594_p8)
}
  0x4f   : > { %s3598_s18 = scalar_lea.vmem %s3812_s8, 2048  ;;  %s3659_s26 = smov [#allocation2]  }
  0x50   : > { %p3599_p1 = scmp.ne.s32.totalorder %s3812_s8, %s3598_s18  ;;  %s3603_s29 = sshll.u32 %s3659_s26, 4  ;;  %s3604_s29 = int_to_ptr.vmem [resolvable:$false] %s3603_s29 }
  0x51   : > { %s3605_s6 = scalar_lea.vmem %s3604_s29, 4096  ;;  %p3606_p10 = scmp.lt.s32.totalorder %s3812_s8, %s3604_s29 }
  0x52   : > { %p3601_p4 = pnand %p3599_p1, %p3585_p11  ;;  %p3607_p12 = scmp.lt.s32.totalorder %s3605_s6, %s3598_s18 }
  0x54   : > { %p3602_p5 = pneg %p3601_p4  ;;  %p3608_p0 = por %p3607_p12, %p3606_p10 }
  0x56   : > { %p3609_p2 = pnand %p3608_p0, %p3602_p5 }
  0x58   : > { %3612 = shalt.err (!%p3609_p2)
}
  0x59   : > { %s3660_s30 = smov 1024   ;;  %p3913_p11 = scmp.ne.s32.totalorder %s3910_s25, 0 }
  0x5a   : > { %3066 = dma.hbm_to_vmem [thread:$0]  (!%p3808_p7), %s3806_s7, 2048, %s3812_s8, %s3814_s27, %s3660_s30, %s3660_s30, %s3657_s10  }
  0x5b   : > { %229 = sbr.rel (%p3913_p11) target bundleno = 827 (0x33b), region = 40  ;;  %s231_s11 = sand.u32 (!%p3913_p11), 1, %s3643_s19  }
  0x5c   : > { %s2661_s12 = sshll.u32 (!%p3913_p11), %s231_s11, 7  ;;  %s232_s13 = scalar_lea.sflag (!%p3913_p11), [#allocation3], %s231_s11 }
  0x5d   : > { %s3846_s15 = scalar_lea.vmem (!%p3913_p11), [#allocation2], %s2661_s12  ;;  %p3914_p13 = scmp.ne.s32.totalorder (!%p3913_p11), %s3909_s24, 0 }
  0x62   : > { %3630 = dma.done.wait (%p3914_p13), %s232_s13, 2048  }
  0x63   : > { %3632 = vsyncadd (%p3914_p13), %s232_s13, 4294965248  ;;  %p3915_p3 = scmp.ne.s32.totalorder %s3908_s23, 0 }
  0x65   : > { %3634 = dma.done.wait (%p3915_p3), [#allocation5], 36096  }
  0x66   : > { %3636 = vsyncadd (%p3915_p3), [#allocation5], 4294931200  ;;  %v3111_v0 = vld [vmem:[#allocation4 + $0x4] ss:$16 sps:$4 sm:$0xff]   ;;  %v3113_v1 = vld [vmem:[#allocation4 + $0xc] ss:$16 sps:$4 sm:$0xff]  }
  0x67   : > { %1841 = vmatprep.subr.bf16.mxu0 %v3111_v0  ;;  %v3115_v2 = vld [vmem:[#allocation4] ss:$16 sps:$4 sm:$0xff]   ;;  %v3116_v3 = vld [vmem:[#allocation4 + $0x8] ss:$16 sps:$4 sm:$0xff]   ;;  %2013 = vmatprep.subr.bf16.mxu1 %v3113_v1  ;;  %v3117_v4 = vld [vmem:[#allocation4 + $0x24] ss:$16 sps:$4 sm:$0xff]  }
  0x68   : > { %1842 = vmatpush1.bf16.msra.mxu0 %v3115_v2  ;;  %2014 = vmatpush1.bf16.msra.mxu1 %v3116_v3  ;;  %v3119_v5 = vld [vmem:[#allocation4 + $0x2c] ss:$16 sps:$4 sm:$0xff]   ;;  %v3121_v6 = vld [vmem:[#allocation4 + $0x20] ss:$16 sps:$4 sm:$0xff]   ;;  %v3122_v7 = vld [vmem:[#allocation4 + $0x28] ss:$16 sps:$4 sm:$0xff]  }
  0x69   : > { %1843 = vmatprep.subr.bf16.mxu0 %v3117_v4  ;;  %2015 = vmatprep.subr.bf16.mxu1 %v3119_v5  ;;  %v3123_v8 = vld [vmem:[#allocation4 + $0x44] ss:$16 sps:$4 sm:$0xff]   ;;  %v3125_v9 = vld [vmem:[#allocation4 + $0x4c] ss:$16 sps:$4 sm:$0xff]   ;;  %v3127_v10 = vld [vmem:[#allocation4 + $0x40] ss:$16 sps:$4 sm:$0xff]  }
  0x6a   : > { %v3128_v11 = vld [vmem:[#allocation4 + $0x48] ss:$16 sps:$4 sm:$0xff]   ;;  %v3129_v12 = vld [vmem:[#allocation4 + $0x64] ss:$16 sps:$4 sm:$0xff]   ;;  %v3131_v13 = vld [vmem:[#allocation4 + $0x6c] ss:$16 sps:$4 sm:$0xff]  }
  0x6b   : > { %v3133_v14 = vld [vmem:[#allocation4 + $0x60] ss:$16 sps:$4 sm:$0xff]   ;;  %v3134_v15 = vld [vmem:[#allocation4 + $0x68] ss:$16 sps:$4 sm:$0xff]   ;;  %v3135_v16 = vld [vmem:[#allocation4 + $0x84] ss:$16 sps:$4 sm:$0xff]  }
  0x6c   : > { %1844 = vmatpush1.bf16.msra.mxu0 %v3121_v6  ;;  %2016 = vmatpush1.bf16.msra.mxu1 %v3122_v7  ;;  %v3137_v17 = vld [vmem:[#allocation4 + $0x8c] ss:$16 sps:$4 sm:$0xff]   ;;  %v3139_v18 = vld [vmem:[#allocation4 + $0x80] ss:$16 sps:$4 sm:$0xff]   ;;  %v3140_v19 = vld [vmem:[#allocation4 + $0x88] ss:$16 sps:$4 sm:$0xff]  }
  0x6d   : > { %1845 = vmatprep.subr.bf16.mxu0 %v3123_v8  ;;  %2017 = vmatprep.subr.bf16.mxu1 %v3125_v9  ;;  %v3141_v20 = vld [vmem:[#allocation4 + $0xa4] ss:$16 sps:$4 sm:$0xff]   ;;  %v3143_v21 = vld [vmem:[#allocation4 + $0xac] ss:$16 sps:$4 sm:$0xff]   ;;  %v3145_v22 = vld [vmem:[#allocation4 + $0xa0] ss:$16 sps:$4 sm:$0xff]  }
  0x6e   : > { %v3146_v23 = vld [vmem:[#allocation4 + $0xa8] ss:$16 sps:$4 sm:$0xff]   ;;  %v3147_v24 = vld [vmem:[#allocation4 + $0xc4] ss:$16 sps:$4 sm:$0xff]   ;;  %v3149_v25 = vld [vmem:[#allocation4 + $0xcc] ss:$16 sps:$4 sm:$0xff]  }
  0x6f   : > { %v3151_v26 = vld [vmem:[#allocation4 + $0xc0] ss:$16 sps:$4 sm:$0xff]   ;;  %v3152_v27 = vld [vmem:[#allocation4 + $0xc8] ss:$16 sps:$4 sm:$0xff]   ;;  %v3153_v28 = vld [vmem:[#allocation4 + $0xe4] ss:$16 sps:$4 sm:$0xff]  }
  0x70   : > { %1846 = vmatpush1.bf16.msra.mxu0 %v3127_v10  ;;  %2018 = vmatpush1.bf16.msra.mxu1 %v3128_v11  ;;  %v3155_v29 = vld [vmem:[#allocation4 + $0xec] ss:$16 sps:$4 sm:$0xff]   ;;  %v3157_v30 = vld [vmem:[#allocation4 + $0xe0] ss:$16 sps:$4 sm:$0xff]   ;;  %v3158_v31 = vld [vmem:[#allocation4 + $0xe8] ss:$16 sps:$4 sm:$0xff]  }
  0x71   : > { %1847 = vmatprep.subr.bf16.mxu0 %v3129_v12  ;;  %2019 = vmatprep.subr.bf16.mxu1 %v3131_v13  ;;  %v3159_v32 = vld [vmem:[#allocation4 + $0x104] ss:$16 sps:$4 sm:$0xff]   ;;  %v3161_v33 = vld [vmem:[#allocation4 + $0x10c] ss:$16 sps:$4 sm:$0xff]   ;;  %v3163_v34 = vld [vmem:[#allocation4 + $0x100] ss:$16 sps:$4 sm:$0xff]  }
  0x72   : > { %v3164_v35 = vld [vmem:[#allocation4 + $0x108] ss:$16 sps:$4 sm:$0xff]   ;;  %v3165_v36 = vld [vmem:[#allocation4 + $0x124] ss:$16 sps:$4 sm:$0xff]   ;;  %v3167_v37 = vld [vmem:[#allocation4 + $0x12c] ss:$16 sps:$4 sm:$0xff]  }
  0x73   : > { %v3169_v38 = vld [vmem:[#allocation4 + $0x120] ss:$16 sps:$4 sm:$0xff]   ;;  %v3170_v39 = vld [vmem:[#allocation4 + $0x128] ss:$16 sps:$4 sm:$0xff]   ;;  %v3171_v40 = vld [vmem:[#allocation4 + $0x144] ss:$16 sps:$4 sm:$0xff]  }
  0x74   : > { %1848 = vmatpush1.bf16.msra.mxu0 %v3133_v14  ;;  %2020 = vmatpush1.bf16.msra.mxu1 %v3134_v15  ;;  %v3173_v41 = vld [vmem:[#allocation4 + $0x14c] ss:$16 sps:$4 sm:$0xff]   ;;  %v3175_v42 = vld [vmem:[#allocation4 + $0x140] ss:$16 sps:$4 sm:$0xff]   ;;  %v3176_v43 = vld [vmem:[#allocation4 + $0x148] ss:$16 sps:$4 sm:$0xff]  }
  0x75   : > { %1849 = vmatprep.subr.bf16.mxu0 %v3135_v16  ;;  %2021 = vmatprep.subr.bf16.mxu1 %v3137_v17  ;;  %v3177_v44 = vld [vmem:[#allocation4 + $0x164] ss:$16 sps:$4 sm:$0xff]   ;;  %v3179_v45 = vld [vmem:[#allocation4 + $0x16c] ss:$16 sps:$4 sm:$0xff]   ;;  %v3181_v48 = vld [vmem:[#allocation4 + $0x160] ss:$16 sps:$4 sm:$0xff]  }
  0x76   : > { %v279_v46 = vld [vmem:[%s3846_s15 + $0x8] sm:$0xff]  ;;  %v3183_v51 = vld [vmem:[#allocation4 + $0x184] ss:$16 sps:$4 sm:$0xff]   ;;  %v3187_v53 = vld [vmem:[#allocation4 + $0x180] ss:$16 sps:$4 sm:$0xff]   ;;  %vm1824_vm0 = vcmask 850944  }
  0x77   : > { %v287_v47 = vld [vmem:[%s3846_s15 + $0x48] sm:$0xff]  ;;  %v3189_v55 = vld [vmem:[#allocation4 + $0x1a4] ss:$16 sps:$4 sm:$0xff]   ;;  %v3193_v57 = vld [vmem:[#allocation4 + $0x1a0] ss:$16 sps:$4 sm:$0xff]   ;;  %vm1828_vm1 = vcmask 1043456  }
  0x78   : > { %1850 = vmatpush1.bf16.msra.mxu0 %v3139_v18  ;;  %2022 = vmatpush1.bf16.msra.mxu1 %v3140_v19  ;;  %v3182_v49 = vld [vmem:[#allocation4 + $0x168] ss:$16 sps:$4 sm:$0xff]   ;;  %v295_v50 = vpack.c.bf16 %v287_v47, %v279_v46  ;;  %v3185_v52 = vld [vmem:[#allocation4 + $0x18c] ss:$16 sps:$4 sm:$0xff]   ;;  %v3195_v59 = vld [vmem:[#allocation4 + $0x1c4] ss:$16 sps:$4 sm:$0xff]  }
  0x79   : > { %1851 = vmatprep.subr.bf16.mxu0 %v3141_v20  ;;  %2023 = vmatprep.subr.bf16.mxu1 %v3143_v21  ;;  %v3188_v54 = vld [vmem:[#allocation4 + $0x188] ss:$16 sps:$4 sm:$0xff]   ;;  %v3191_v56 = vld [vmem:[#allocation4 + $0x1ac] ss:$16 sps:$4 sm:$0xff]   ;;  %v3199_v61 = vld [vmem:[#allocation4 + $0x1c0] ss:$16 sps:$4 sm:$0xff]  }
  0x7a   : > { %1873 = vmatprep.mubr.bf16.mxu0 %v295_v50  ;;  %2045 = vmatprep.mubr.bf16.mxu1 %v295_v50  ;;  %v3194_v58 = vld [vmem:[#allocation4 + $0x1a8] ss:$16 sps:$4 sm:$0xff]   ;;  %v3197_v60 = vld [vmem:[#allocation4 + $0x1cc] ss:$16 sps:$4 sm:$0xff]   ;;  %v3201_v63 = vld [vmem:[#allocation4 + $0x1e4] ss:$16 sps:$4 sm:$0xff]  }
  0x7b   : > { %v3200_v62 = vld [vmem:[#allocation4 + $0x1c8] ss:$16 sps:$4 sm:$0xff]   ;;  %v3203_v0 = vld [vmem:[#allocation4 + $0x1ec] ss:$16 sps:$4 sm:$0xff]   ;;  %v3205_v1 = vld [vmem:[#allocation4 + $0x1e0] ss:$16 sps:$4 sm:$0xff]  }
  0x7c   : > { %1852 = vmatpush1.bf16.msra.mxu0 %v3145_v22  ;;  %2024 = vmatpush1.bf16.msra.mxu1 %v3146_v23  ;;  %v3206_v2 = vld [vmem:[#allocation4 + $0x1e8] ss:$16 sps:$4 sm:$0xff]   ;;  %v3209_v3 = vld [vmem:[#allocation4 + $0x204] ss:$16 sps:$4 sm:$0xff]   ;;  %v3212_v6 = vld [vmem:[#allocation4 + $0x20c] ss:$16 sps:$4 sm:$0xff]  }
  0x7d   : > { %1853 = vmatprep.subr.bf16.mxu0 %v3147_v24  ;;  %2025 = vmatprep.subr.bf16.mxu1 %v3149_v25  ;;  %v278_v4 = vld [vmem:[%s3846_s15] sm:$0xff]  ;;  %v3210_v8 = vld [vmem:[#allocation4 + $0x208] ss:$16 sps:$4 sm:$0xff]   ;;  %v3218_v11 = vld [vmem:[#allocation4 + $0x22c] ss:$16 sps:$4 sm:$0xff]   ;;  %s2664_s7 = sshll.u32 %s2650_s22, 1 }
  0x7e   : > { %v286_v5 = vld [vmem:[%s3846_s15 + $0x40] sm:$0xff]  ;;  %v3216_v13 = vld [vmem:[#allocation4 + $0x228] ss:$16 sps:$4 sm:$0xff]   ;;  %v3224_v15 = vld [vmem:[#allocation4 + $0x24c] ss:$16 sps:$4 sm:$0xff]   ;;  %p272_p7 = scmp.lt.s32.totalorder %s2664_s7, 7 }
  0x7f   : > { %v3207_v7 = vld [vmem:[#allocation4 + $0x200] ss:$16 sps:$4 sm:$0xff]   ;;  %v294_v9 = vpack.c.bf16 %v286_v5, %v278_v4  ;;  %v3215_v10 = vld [vmem:[#allocation4 + $0x224] ss:$16 sps:$4 sm:$0xff]   ;;  %v3222_v17 = vld [vmem:[#allocation4 + $0x248] ss:$16 sps:$4 sm:$0xff]  }
  0x80   : > { %1854 = vmatpush1.bf16.msra.mxu0 %v3151_v26  ;;  %2026 = vmatpush1.bf16.msra.mxu1 %v3152_v27  ;;  %v3213_v12 = vld [vmem:[#allocation4 + $0x220] ss:$16 sps:$4 sm:$0xff]   ;;  %v3221_v14 = vld [vmem:[#allocation4 + $0x244] ss:$16 sps:$4 sm:$0xff]   ;;  %v3230_v19 = vld [vmem:[#allocation4 + $0x26c] ss:$16 sps:$4 sm:$0xff]  }
  0x81   : > { %1855 = vmatprep.subr.bf16.mxu0 %v3153_v28  ;;  %2027 = vmatprep.subr.bf16.mxu1 %v3155_v29  ;;  %v3219_v16 = vld [vmem:[#allocation4 + $0x240] ss:$16 sps:$4 sm:$0xff]   ;;  %v3227_v18 = vld [vmem:[#allocation4 + $0x264] ss:$16 sps:$4 sm:$0xff]   ;;  %v3228_v21 = vld [vmem:[#allocation4 + $0x268] ss:$16 sps:$4 sm:$0xff]  }
  0x82   : > { %v3225_v20 = vld [vmem:[#allocation4 + $0x260] ss:$16 sps:$4 sm:$0xff]   ;;  %v3233_v22 = vld [vmem:[#allocation4 + $0x284] ss:$16 sps:$4 sm:$0xff]   ;;  %v3236_v23 = vld [vmem:[#allocation4 + $0x28c] ss:$16 sps:$4 sm:$0xff]  }
  0x83   : > { %v3231_v24 = vld [vmem:[#allocation4 + $0x280] ss:$16 sps:$4 sm:$0xff]   ;;  %v3234_v25 = vld [vmem:[#allocation4 + $0x288] ss:$16 sps:$4 sm:$0xff]   ;;  %v3239_v26 = vld [vmem:[#allocation4 + $0x2a4] ss:$16 sps:$4 sm:$0xff]  }
  0x84   : > { %1856 = vmatpush1.bf16.msra.mxu0 %v3157_v30  ;;  %2028 = vmatpush1.bf16.msra.mxu1 %v3158_v31  ;;  %v3242_v27 = vld [vmem:[#allocation4 + $0x2ac] ss:$16 sps:$4 sm:$0xff]   ;;  %v3237_v28 = vld [vmem:[#allocation4 + $0x2a0] ss:$16 sps:$4 sm:$0xff]   ;;  %v3240_v29 = vld [vmem:[#allocation4 + $0x2a8] ss:$16 sps:$4 sm:$0xff]  }
  0x85   : > { %1857 = vmatprep.subr.bf16.mxu0 %v3159_v32  ;;  %2029 = vmatprep.subr.bf16.mxu1 %v3161_v33  ;;  %v3245_v30 = vld [vmem:[#allocation4 + $0x2c4] ss:$16 sps:$4 sm:$0xff]   ;;  %v3248_v31 = vld [vmem:[#allocation4 + $0x2cc] ss:$16 sps:$4 sm:$0xff]   ;;  %v3261_v47 = vld [vmem:[#allocation4 + $0x320] ss:$16 sps:$4 sm:$0xff]  }
  0x86   : > { %v281_v32 = vld [vmem:[%s3846_s15 + $0x18] sm:$0xff]  ;;  %v3299_v5 = vld [vmem:[#allocation4 + $0x3e4] ss:$16 sps:$4 sm:$0xff]   ;;  %s3921_s7 = smov (!%p272_p7, %s2664_s7), 7 }
  0x87   : > { %v289_v33 = vld [vmem:[%s3846_s15 + $0x58] sm:$0xff]  ;;  %s2665_s8 = sshll.u32 %s3921_s7, 2 }
  0x88   : > { %1858 = vmatpush1.bf16.msra.mxu0 %v3163_v34  ;;  %2030 = vmatpush1.bf16.msra.mxu1 %v3164_v35  ;;  %v3243_v34 = vld [vmem:[#allocation4 + $0x2c0] ss:$16 sps:$4 sm:$0xff]   ;;  %v3246_v35 = vld [vmem:[#allocation4 + $0x2c8] ss:$16 sps:$4 sm:$0xff]   ;;  %v3266_v46 = vld [vmem:[#allocation4 + $0x32c] ss:$16 sps:$4 sm:$0xff]   ;;  %s275_s16 = scalar_lea.vmem %s3903_s5, %s2665_s8 }
  0x89   : > { %1859 = vmatprep.subr.bf16.mxu0 %v3165_v36  ;;  %2031 = vmatprep.subr.bf16.mxu1 %v3167_v37  ;;  %v297_v36 = vpack.c.bf16 %v289_v33, %v281_v32  ;;  %v3251_v37 = vld [vmem:[#allocation4 + $0x2e4] ss:$16 sps:$4 sm:$0xff]   ;;  %v3272_v50 = vld [vmem:[#allocation4 + $0x34c] ss:$16 sps:$4 sm:$0xff]   ;;  %v3294_v4 = vld [vmem:[#allocation4 + $0x3c8] ss:$16 sps:$4 sm:$0xff]  }
  0x8a   : > { %v3332_v32 = vld [vmem:[#allocation4 + $0x48c] ss:$16 sps:$4 sm:$0xff]   ;;  %v3327_v33 = vld [vmem:[#allocation4 + $0x480] ss:$16 sps:$4 sm:$0xff]  }
  0x8c   : > { %1860 = vmatpush1.bf16.msra.mxu0 %v3169_v38  ;;  %2032 = vmatpush1.bf16.msra.mxu1 %v3170_v39  ;;  %v3254_v38 = vld [vmem:[#allocation4 + $0x2ec] ss:$16 sps:$4 sm:$0xff]   ;;  %v3249_v39 = vld [vmem:[#allocation4 + $0x2e0] ss:$16 sps:$4 sm:$0xff]  }
  0x8d   : > { %1861 = vmatprep.subr.bf16.mxu0 %v3171_v40  ;;  %2033 = vmatprep.subr.bf16.mxu1 %v3173_v41  ;;  %v3252_v40 = vld [vmem:[#allocation4 + $0x2e8] ss:$16 sps:$4 sm:$0xff]   ;;  %v3257_v41 = vld [vmem:[#allocation4 + $0x304] ss:$16 sps:$4 sm:$0xff]  }
  0x90   : > { %1862 = vmatpush1.bf16.msra.mxu0 %v3175_v42  ;;  %2034 = vmatpush1.bf16.msra.mxu1 %v3176_v43  ;;  %v3260_v42 = vld [vmem:[#allocation4 + $0x30c] ss:$16 sps:$4 sm:$0xff]   ;;  %v3255_v43 = vld [vmem:[#allocation4 + $0x300] ss:$16 sps:$4 sm:$0xff]  }
  0x91   : > { %1863 = vmatprep.subr.bf16.mxu0 %v3177_v44  ;;  %2035 = vmatprep.subr.bf16.mxu1 %v3179_v45  ;;  %v3258_v44 = vld [vmem:[#allocation4 + $0x308] ss:$16 sps:$4 sm:$0xff]   ;;  %v3263_v45 = vld [vmem:[#allocation4 + $0x324] ss:$16 sps:$4 sm:$0xff]  }
  0x94   : > { %1864 = vmatpush1.bf16.msra.mxu0 %v3181_v48  ;;  %2036 = vmatpush1.bf16.msra.mxu1 %v3182_v49  ;;  %v3264_v48 = vld [vmem:[#allocation4 + $0x328] ss:$16 sps:$4 sm:$0xff]   ;;  %v3269_v49 = vld [vmem:[#allocation4 + $0x344] ss:$16 sps:$4 sm:$0xff]  }
  0x95   : > { %1865 = vmatprep.subr.bf16.mxu0 %v3183_v51  ;;  %2037 = vmatprep.subr.bf16.mxu1 %v3185_v52  ;;  %v3267_v51 = vld [vmem:[#allocation4 + $0x340] ss:$16 sps:$4 sm:$0xff]   ;;  %v3270_v52 = vld [vmem:[#allocation4 + $0x348] ss:$16 sps:$4 sm:$0xff]  }
  0x98   : > { %1866 = vmatpush1.bf16.msra.mxu0 %v3187_v53  ;;  %2038 = vmatpush1.bf16.msra.mxu1 %v3188_v54  ;;  %v3275_v53 = vld [vmem:[#allocation4 + $0x364] ss:$16 sps:$4 sm:$0xff]   ;;  %v3278_v54 = vld [vmem:[#allocation4 + $0x36c] ss:$16 sps:$4 sm:$0xff]  }
  0x99   : > { %1867 = vmatprep.subr.bf16.mxu0 %v3189_v55  ;;  %2039 = vmatprep.subr.bf16.mxu1 %v3191_v56  ;;  %v3273_v55 = vld [vmem:[#allocation4 + $0x360] ss:$16 sps:$4 sm:$0xff]   ;;  %v3276_v56 = vld [vmem:[#allocation4 + $0x368] ss:$16 sps:$4 sm:$0xff]  }
  0x9c   : > { %1868 = vmatpush1.bf16.msra.mxu0 %v3193_v57  ;;  %2040 = vmatpush1.bf16.msra.mxu1 %v3194_v58  ;;  %v3281_v57 = vld [vmem:[#allocation4 + $0x384] ss:$16 sps:$4 sm:$0xff]   ;;  %v3284_v58 = vld [vmem:[#allocation4 + $0x38c] ss:$16 sps:$4 sm:$0xff]  }
  0x9d   : > { %1869 = vmatprep.subr.bf16.mxu0 %v3195_v59  ;;  %2041 = vmatprep.subr.bf16.mxu1 %v3197_v60  ;;  %v3279_v59 = vld [vmem:[#allocation4 + $0x380] ss:$16 sps:$4 sm:$0xff]   ;;  %v3282_v60 = vld [vmem:[#allocation4 + $0x388] ss:$16 sps:$4 sm:$0xff]  }
  0xa0   : > { %1870 = vmatpush1.bf16.msra.mxu0 %v3199_v61  ;;  %2042 = vmatpush1.bf16.msra.mxu1 %v3200_v62  ;;  %v3287_v61 = vld [vmem:[#allocation4 + $0x3a4] ss:$16 sps:$4 sm:$0xff]   ;;  %v3290_v62 = vld [vmem:[#allocation4 + $0x3ac] ss:$16 sps:$4 sm:$0xff]  }
  0xa1   : > { %1871 = vmatprep.subr.bf16.mxu0 %v3201_v63  ;;  %2043 = vmatprep.subr.bf16.mxu1 %v3203_v0  ;;  %v3285_v63 = vld [vmem:[#allocation4 + $0x3a0] ss:$16 sps:$4 sm:$0xff]   ;;  %v3288_v0 = vld [vmem:[#allocation4 + $0x3a8] ss:$16 sps:$4 sm:$0xff]  }
  0xa4   : > { %1872 = vmatpush1.bf16.msra.mxu0 %v3205_v1  ;;  %2044 = vmatpush1.bf16.msra.mxu1 %v3206_v2  ;;  %v3293_v1 = vld [vmem:[#allocation4 + $0x3c4] ss:$16 sps:$4 sm:$0xff]   ;;  %v3296_v2 = vld [vmem:[#allocation4 + $0x3cc] ss:$16 sps:$4 sm:$0xff]  }
  0xa5   : > { %1884 = vmatprep.subr.bf16.mxu0 %v3209_v3  ;;  %2056 = vmatprep.subr.bf16.mxu1 %v3212_v6  ;;  %v3291_v3 = vld [vmem:[#allocation4 + $0x3c0] ss:$16 sps:$4 sm:$0xff]   ;;  %v3302_v6 = vld [vmem:[#allocation4 + $0x3ec] ss:$16 sps:$4 sm:$0xff]  }
  0xa7   : > { %1874 = vmatmul.mubr.bf16.vlgmr.msra.gmra.mrb[0].mxu0 %v294_v9  ;;  %2046 = vmatmul.mubr.bf16.vlgmr.msra.gmra.mrb[0].mxu1 %v294_v9  ;;  %v3305_v9 = vld [vmem:[#allocation4 + $0x404] ss:$16 sps:$4 sm:$0xff]  }
  0xa8   : > { %1885 = vmatpush1.bf16.msra.mxu0 %v3207_v7  ;;  %2057 = vmatpush1.bf16.msra.mxu1 %v3210_v8  ;;  %v3297_v7 = vld [vmem:[#allocation4 + $0x3e0] ss:$16 sps:$4 sm:$0xff]   ;;  %v3300_v8 = vld [vmem:[#allocation4 + $0x3e8] ss:$16 sps:$4 sm:$0xff]  }
  0xa9   : > { %1886 = vmatprep.subr.bf16.mxu0 %v3215_v10  ;;  %2058 = vmatprep.subr.bf16.mxu1 %v3218_v11  ;;  %v280_v10 = vld [vmem:[%s3846_s15 + $0x10] sm:$0xff] }
  0xaa   : > { %1916 = vmatprep.mubr.bf16.mxu0 %v297_v36  ;;  %2088 = vmatprep.mubr.bf16.mxu1 %v297_v36  ;;  %v288_v11 = vld [vmem:[%s3846_s15 + $0x50] sm:$0xff]  ;;  %v3338_v36 = vld [vmem:[#allocation4 + $0x4ac] ss:$16 sps:$4 sm:$0xff]  }
  0xac   : > { %1887 = vmatpush1.bf16.msra.mxu0 %v3213_v12  ;;  %2059 = vmatpush1.bf16.msra.mxu1 %v3216_v13  ;;  %v3308_v12 = vld [vmem:[#allocation4 + $0x40c] ss:$16 sps:$4 sm:$0xff]   ;;  %v3303_v13 = vld [vmem:[#allocation4 + $0x400] ss:$16 sps:$4 sm:$0xff]  }
  0xad   : > { %1888 = vmatprep.subr.bf16.mxu0 %v3221_v14  ;;  %2060 = vmatprep.subr.bf16.mxu1 %v3224_v15  ;;  %v3306_v14 = vld [vmem:[#allocation4 + $0x408] ss:$16 sps:$4 sm:$0xff]   ;;  %v296_v15 = vpack.c.bf16 %v288_v11, %v280_v10  ;;  %v3395_v11 = vld [vmem:[#allocation4 + $0x5e4] ss:$16 sps:$4 sm:$0xff]  }
  0xae   : > { %v3390_v10 = vld [vmem:[#allocation4 + $0x5c8] ss:$16 sps:$4 sm:$0xff]  }
  0xb0   : > { %1889 = vmatpush1.bf16.msra.mxu0 %v3219_v16  ;;  %2061 = vmatpush1.bf16.msra.mxu1 %v3222_v17  ;;  %v3311_v16 = vld [vmem:[#allocation4 + $0x424] ss:$16 sps:$4 sm:$0xff]   ;;  %v3314_v17 = vld [vmem:[#allocation4 + $0x42c] ss:$16 sps:$4 sm:$0xff]  }
  0xb1   : > { %1890 = vmatprep.subr.bf16.mxu0 %v3227_v18  ;;  %2062 = vmatprep.subr.bf16.mxu1 %v3230_v19  ;;  %v283_v18 = vld [vmem:[%s3846_s15 + $0x28] sm:$0xff] }
  0xb2   : > { %v291_v19 = vld [vmem:[%s3846_s15 + $0x68] sm:$0xff] }
  0xb4   : > { %1891 = vmatpush1.bf16.msra.mxu0 %v3225_v20  ;;  %2063 = vmatpush1.bf16.msra.mxu1 %v3228_v21  ;;  %v3309_v20 = vld [vmem:[#allocation4 + $0x420] ss:$16 sps:$4 sm:$0xff]   ;;  %v3312_v21 = vld [vmem:[#allocation4 + $0x428] ss:$16 sps:$4 sm:$0xff]  }
  0xb5   : > { %1892 = vmatprep.subr.bf16.mxu0 %v3233_v22  ;;  %2064 = vmatprep.subr.bf16.mxu1 %v3236_v23  ;;  %v299_v22 = vpack.c.bf16 %v291_v19, %v283_v18  ;;  %v3317_v23 = vld [vmem:[#allocation4 + $0x444] ss:$16 sps:$4 sm:$0xff]   ;;  %v3404_v18 = vld [vmem:[#allocation4 + $0x60c] ss:$16 sps:$4 sm:$0xff]   ;;  %v3399_v19 = vld [vmem:[#allocation4 + $0x600] ss:$16 sps:$4 sm:$0xff]  }
  0xb8   : > { %1893 = vmatpush1.bf16.msra.mxu0 %v3231_v24  ;;  %2065 = vmatpush1.bf16.msra.mxu1 %v3234_v25  ;;  %v3320_v24 = vld [vmem:[#allocation4 + $0x44c] ss:$16 sps:$4 sm:$0xff]   ;;  %v3315_v25 = vld [vmem:[#allocation4 + $0x440] ss:$16 sps:$4 sm:$0xff]  }
  0xb9   : > { %1894 = vmatprep.subr.bf16.mxu0 %v3239_v26  ;;  %2066 = vmatprep.subr.bf16.mxu1 %v3242_v27  ;;  %v3318_v26 = vld [vmem:[#allocation4 + $0x448] ss:$16 sps:$4 sm:$0xff]   ;;  %v3323_v27 = vld [vmem:[#allocation4 + $0x464] ss:$16 sps:$4 sm:$0xff]  }
  0xbc   : > { %1895 = vmatpush1.bf16.msra.mxu0 %v3237_v28  ;;  %2067 = vmatpush1.bf16.msra.mxu1 %v3240_v29  ;;  %v3326_v28 = vld [vmem:[#allocation4 + $0x46c] ss:$16 sps:$4 sm:$0xff]   ;;  %v3321_v29 = vld [vmem:[#allocation4 + $0x460] ss:$16 sps:$4 sm:$0xff]  }
  0xbd   : > { %1896 = vmatprep.subr.bf16.mxu0 %v3245_v30  ;;  %2068 = vmatprep.subr.bf16.mxu1 %v3248_v31  ;;  %v3324_v30 = vld [vmem:[#allocation4 + $0x468] ss:$16 sps:$4 sm:$0xff]   ;;  %v3329_v31 = vld [vmem:[#allocation4 + $0x484] ss:$16 sps:$4 sm:$0xff]  }
  0xc0   : > { %1897 = vmatpush1.bf16.msra.mxu0 %v3243_v34  ;;  %2069 = vmatpush1.bf16.msra.mxu1 %v3246_v35  ;;  %v3330_v34 = vld [vmem:[#allocation4 + $0x488] ss:$16 sps:$4 sm:$0xff]   ;;  %v3335_v35 = vld [vmem:[#allocation4 + $0x4a4] ss:$16 sps:$4 sm:$0xff]  }
  0xc1   : > { %1898 = vmatprep.subr.bf16.mxu0 %v3251_v37  ;;  %2070 = vmatprep.subr.bf16.mxu1 %v3254_v38  ;;  %v3333_v37 = vld [vmem:[#allocation4 + $0x4a0] ss:$16 sps:$4 sm:$0xff]   ;;  %v3336_v38 = vld [vmem:[#allocation4 + $0x4a8] ss:$16 sps:$4 sm:$0xff]  }
  0xc4   : > { %1899 = vmatpush1.bf16.msra.mxu0 %v3249_v39  ;;  %2071 = vmatpush1.bf16.msra.mxu1 %v3252_v40  ;;  %v3341_v39 = vld [vmem:[#allocation4 + $0x4c4] ss:$16 sps:$4 sm:$0xff]   ;;  %v3344_v40 = vld [vmem:[#allocation4 + $0x4cc] ss:$16 sps:$4 sm:$0xff]  }
  0xc5   : > { %1900 = vmatprep.subr.bf16.mxu0 %v3257_v41  ;;  %2072 = vmatprep.subr.bf16.mxu1 %v3260_v42  ;;  %v3339_v41 = vld [vmem:[#allocation4 + $0x4c0] ss:$16 sps:$4 sm:$0xff]   ;;  %v3342_v42 = vld [vmem:[#allocation4 + $0x4c8] ss:$16 sps:$4 sm:$0xff]  }
  0xc8   : > { %1901 = vmatpush1.bf16.msra.mxu0 %v3255_v43  ;;  %2073 = vmatpush1.bf16.msra.mxu1 %v3258_v44  ;;  %v3347_v43 = vld [vmem:[#allocation4 + $0x4e4] ss:$16 sps:$4 sm:$0xff]   ;;  %v3350_v44 = vld [vmem:[#allocation4 + $0x4ec] ss:$16 sps:$4 sm:$0xff]  }
  0xc9   : > { %1902 = vmatprep.subr.bf16.mxu0 %v3263_v45  ;;  %2074 = vmatprep.subr.bf16.mxu1 %v3266_v46  ;;  %v3345_v45 = vld [vmem:[#allocation4 + $0x4e0] ss:$16 sps:$4 sm:$0xff]   ;;  %v3348_v46 = vld [vmem:[#allocation4 + $0x4e8] ss:$16 sps:$4 sm:$0xff]  }
  0xcc   : > { %1903 = vmatpush1.bf16.msra.mxu0 %v3261_v47  ;;  %2075 = vmatpush1.bf16.msra.mxu1 %v3264_v48  ;;  %v3353_v47 = vld [vmem:[#allocation4 + $0x504] ss:$16 sps:$4 sm:$0xff]   ;;  %v3356_v48 = vld [vmem:[#allocation4 + $0x50c] ss:$16 sps:$4 sm:$0xff]  }
  0xcd   : > { %1904 = vmatprep.subr.bf16.mxu0 %v3269_v49  ;;  %2076 = vmatprep.subr.bf16.mxu1 %v3272_v50  ;;  %v3351_v49 = vld [vmem:[#allocation4 + $0x500] ss:$16 sps:$4 sm:$0xff]   ;;  %v3354_v50 = vld [vmem:[#allocation4 + $0x508] ss:$16 sps:$4 sm:$0xff]  }
  0xd0   : > { %1905 = vmatpush1.bf16.msra.mxu0 %v3267_v51  ;;  %2077 = vmatpush1.bf16.msra.mxu1 %v3270_v52  ;;  %v3359_v51 = vld [vmem:[#allocation4 + $0x524] ss:$16 sps:$4 sm:$0xff]   ;;  %v3362_v52 = vld [vmem:[#allocation4 + $0x52c] ss:$16 sps:$4 sm:$0xff]  }
  0xd1   : > { %1906 = vmatprep.subr.bf16.mxu0 %v3275_v53  ;;  %2078 = vmatprep.subr.bf16.mxu1 %v3278_v54  ;;  %v3357_v53 = vld [vmem:[#allocation4 + $0x520] ss:$16 sps:$4 sm:$0xff]   ;;  %v3360_v54 = vld [vmem:[#allocation4 + $0x528] ss:$16 sps:$4 sm:$0xff]  }
  0xd4   : > { %1907 = vmatpush1.bf16.msra.mxu0 %v3273_v55  ;;  %2079 = vmatpush1.bf16.msra.mxu1 %v3276_v56  ;;  %v3365_v55 = vld [vmem:[#allocation4 + $0x544] ss:$16 sps:$4 sm:$0xff]   ;;  %v3368_v56 = vld [vmem:[#allocation4 + $0x54c] ss:$16 sps:$4 sm:$0xff]  }
  0xd5   : > { %1908 = vmatprep.subr.bf16.mxu0 %v3281_v57  ;;  %2080 = vmatprep.subr.bf16.mxu1 %v3284_v58  ;;  %v3363_v57 = vld [vmem:[#allocation4 + $0x540] ss:$16 sps:$4 sm:$0xff]   ;;  %v3366_v58 = vld [vmem:[#allocation4 + $0x548] ss:$16 sps:$4 sm:$0xff]  }
  0xd8   : > { %1909 = vmatpush1.bf16.msra.mxu0 %v3279_v59  ;;  %2081 = vmatpush1.bf16.msra.mxu1 %v3282_v60  ;;  %v3371_v59 = vld [vmem:[#allocation4 + $0x564] ss:$16 sps:$4 sm:$0xff]   ;;  %v3374_v60 = vld [vmem:[#allocation4 + $0x56c] ss:$16 sps:$4 sm:$0xff]  }
  0xd9   : > { %1910 = vmatprep.subr.bf16.mxu0 %v3287_v61  ;;  %2082 = vmatprep.subr.bf16.mxu1 %v3290_v62  ;;  %v3369_v61 = vld [vmem:[#allocation4 + $0x560] ss:$16 sps:$4 sm:$0xff]   ;;  %v3372_v62 = vld [vmem:[#allocation4 + $0x568] ss:$16 sps:$4 sm:$0xff]  }
  0xdc   : > { %1911 = vmatpush1.bf16.msra.mxu0 %v3285_v63  ;;  %2083 = vmatpush1.bf16.msra.mxu1 %v3288_v0  ;;  %v3377_v63 = vld [vmem:[#allocation4 + $0x584] ss:$16 sps:$4 sm:$0xff]   ;;  %v3380_v0 = vld [vmem:[#allocation4 + $0x58c] ss:$16 sps:$4 sm:$0xff]  }
  0xdd   : > { %1912 = vmatprep.subr.bf16.mxu0 %v3293_v1  ;;  %2084 = vmatprep.subr.bf16.mxu1 %v3296_v2  ;;  %v3375_v1 = vld [vmem:[#allocation4 + $0x580] ss:$16 sps:$4 sm:$0xff]   ;;  %v3378_v2 = vld [vmem:[#allocation4 + $0x588] ss:$16 sps:$4 sm:$0xff]  }
  0xe0   : > { %1913 = vmatpush1.bf16.msra.mxu0 %v3291_v3  ;;  %2085 = vmatpush1.bf16.msra.mxu1 %v3294_v4  ;;  %v3383_v3 = vld [vmem:[#allocation4 + $0x5a4] ss:$16 sps:$4 sm:$0xff]   ;;  %v3386_v4 = vld [vmem:[#allocation4 + $0x5ac] ss:$16 sps:$4 sm:$0xff]  }
  0xe1   : > { %1914 = vmatprep.subr.bf16.mxu0 %v3299_v5  ;;  %2086 = vmatprep.subr.bf16.mxu1 %v3302_v6  ;;  %v3381_v5 = vld [vmem:[#allocation4 + $0x5a0] ss:$16 sps:$4 sm:$0xff]   ;;  %v3384_v6 = vld [vmem:[#allocation4 + $0x5a8] ss:$16 sps:$4 sm:$0xff]  }
  0xe4   : > { %1915 = vmatpush1.bf16.msra.mxu0 %v3297_v7  ;;  %2087 = vmatpush1.bf16.msra.mxu1 %v3300_v8  ;;  %v3389_v7 = vld [vmem:[#allocation4 + $0x5c4] ss:$16 sps:$4 sm:$0xff]   ;;  %v3392_v8 = vld [vmem:[#allocation4 + $0x5cc] ss:$16 sps:$4 sm:$0xff]  }
  0xe5   : > { %1927 = vmatprep.subr.bf16.mxu0 %v3305_v9  ;;  %2099 = vmatprep.subr.bf16.mxu1 %v3308_v12  ;;  %v3387_v9 = vld [vmem:[#allocation4 + $0x5c0] ss:$16 sps:$4 sm:$0xff]   ;;  %v3398_v12 = vld [vmem:[#allocation4 + $0x5ec] ss:$16 sps:$4 sm:$0xff]  }
  0xe7   : > { %1917 = vmatmul.mubr.bf16.vlgmr.msra.gmra.mrb[0].mxu0 %v296_v15  ;;  %2089 = vmatmul.mubr.bf16.vlgmr.msra.gmra.mrb[0].mxu1 %v296_v15  ;;  %v3401_v15 = vld [vmem:[#allocation4 + $0x604] ss:$16 sps:$4 sm:$0xff]  }
  0xe8   : > { %1928 = vmatpush1.bf16.msra.mxu0 %v3303_v13  ;;  %2100 = vmatpush1.bf16.msra.mxu1 %v3306_v14  ;;  %v3393_v13 = vld [vmem:[#allocation4 + $0x5e0] ss:$16 sps:$4 sm:$0xff]   ;;  %v3396_v14 = vld [vmem:[#allocation4 + $0x5e8] ss:$16 sps:$4 sm:$0xff]  }
  0xe9   : > { %1929 = vmatprep.subr.bf16.mxu0 %v3311_v16  ;;  %2101 = vmatprep.subr.bf16.mxu1 %v3314_v17  ;;  %v282_v16 = vld [vmem:[%s3846_s15 + $0x20] sm:$0xff] }
  0xea   : > { %1959 = vmatprep.mubr.bf16.mxu0 %v299_v22  ;;  %2131 = vmatprep.mubr.bf16.mxu1 %v299_v22  ;;  %v290_v17 = vld [vmem:[%s3846_s15 + $0x60] sm:$0xff]  ;;  %v293_v22 = vld [vmem:[%s3846_s15 + $0x78] sm:$0xff] }
  0xec   : > { %1930 = vmatpush1.bf16.msra.mxu0 %v3309_v20  ;;  %2102 = vmatpush1.bf16.msra.mxu1 %v3312_v21  ;;  %v285_v20 = vld [vmem:[%s3846_s15 + $0x38] sm:$0xff]  ;;  %v298_v21 = vpack.c.bf16 %v290_v17, %v282_v16 }
  0xed   : > { %1931 = vmatprep.subr.bf16.mxu0 %v3317_v23  ;;  %2103 = vmatprep.subr.bf16.mxu1 %v3320_v24  ;;  %v3402_v23 = vld [vmem:[#allocation4 + $0x608] ss:$16 sps:$4 sm:$0xff]   ;;  %v3407_v24 = vld [vmem:[#allocation4 + $0x624] ss:$16 sps:$4 sm:$0xff]  }
  0xf0   : > { %1932 = vmatpush1.bf16.msra.mxu0 %v3315_v25  ;;  %2104 = vmatpush1.bf16.msra.mxu1 %v3318_v26  ;;  %v3410_v25 = vld [vmem:[#allocation4 + $0x62c] ss:$16 sps:$4 sm:$0xff]   ;;  %v3405_v26 = vld [vmem:[#allocation4 + $0x620] ss:$16 sps:$4 sm:$0xff]  }
  0xf1   : > { %1933 = vmatprep.subr.bf16.mxu0 %v3323_v27  ;;  %2105 = vmatprep.subr.bf16.mxu1 %v3326_v28  ;;  %v3408_v27 = vld [vmem:[#allocation4 + $0x628] ss:$16 sps:$4 sm:$0xff]   ;;  %v301_v28 = vpack.c.bf16 %v293_v22, %v285_v20  ;;  %v292_v20 = vld [vmem:[%s3846_s15 + $0x70] sm:$0xff] }
  0xf4   : > { %1934 = vmatpush1.bf16.msra.mxu0 %v3321_v29  ;;  %2106 = vmatpush1.bf16.msra.mxu1 %v3324_v30  ;;  %v3413_v29 = vld [vmem:[#allocation4 + $0x644] ss:$16 sps:$4 sm:$0xff]   ;;  %v3416_v30 = vld [vmem:[#allocation4 + $0x64c] ss:$16 sps:$4 sm:$0xff]  }
  0xf5   : > { %1935 = vmatprep.subr.bf16.mxu0 %v3329_v31  ;;  %2107 = vmatprep.subr.bf16.mxu1 %v3332_v32  ;;  %v3411_v31 = vld [vmem:[#allocation4 + $0x640] ss:$16 sps:$4 sm:$0xff]   ;;  %v3414_v32 = vld [vmem:[#allocation4 + $0x648] ss:$16 sps:$4 sm:$0xff]  }
  0xf8   : > { %1936 = vmatpush1.bf16.msra.mxu0 %v3327_v33  ;;  %2108 = vmatpush1.bf16.msra.mxu1 %v3330_v34  ;;  %v3419_v33 = vld [vmem:[#allocation4 + $0x664] ss:$16 sps:$4 sm:$0xff]   ;;  %v3422_v34 = vld [vmem:[#allocation4 + $0x66c] ss:$16 sps:$4 sm:$0xff]  }
  0xf9   : > { %1937 = vmatprep.subr.bf16.mxu0 %v3335_v35  ;;  %2109 = vmatprep.subr.bf16.mxu1 %v3338_v36  ;;  %v3417_v35 = vld [vmem:[#allocation4 + $0x660] ss:$16 sps:$4 sm:$0xff]   ;;  %v3420_v36 = vld [vmem:[#allocation4 + $0x668] ss:$16 sps:$4 sm:$0xff]  }
  0xfc   : > { %1938 = vmatpush1.bf16.msra.mxu0 %v3333_v37  ;;  %2110 = vmatpush1.bf16.msra.mxu1 %v3336_v38  ;;  %v3425_v37 = vld [vmem:[#allocation4 + $0x684] ss:$16 sps:$4 sm:$0xff]   ;;  %v3428_v38 = vld [vmem:[#allocation4 + $0x68c] ss:$16 sps:$4 sm:$0xff]  }
  0xfd   : > { %1939 = vmatprep.subr.bf16.mxu0 %v3341_v39  ;;  %2111 = vmatprep.subr.bf16.mxu1 %v3344_v40  ;;  %v3423_v39 = vld [vmem:[#allocation4 + $0x680] ss:$16 sps:$4 sm:$0xff]   ;;  %v3426_v40 = vld [vmem:[#allocation4 + $0x688] ss:$16 sps:$4 sm:$0xff]  }
 0x100   : > { %1940 = vmatpush1.bf16.msra.mxu0 %v3339_v41  ;;  %2112 = vmatpush1.bf16.msra.mxu1 %v3342_v42  ;;  %v3431_v41 = vld [vmem:[#allocation4 + $0x6a4] ss:$16 sps:$4 sm:$0xff]   ;;  %v3434_v42 = vld [vmem:[#allocation4 + $0x6ac] ss:$16 sps:$4 sm:$0xff]  }
 0x101   : > { %1941 = vmatprep.subr.bf16.mxu0 %v3347_v43  ;;  %2113 = vmatprep.subr.bf16.mxu1 %v3350_v44  ;;  %v3429_v43 = vld [vmem:[#allocation4 + $0x6a0] ss:$16 sps:$4 sm:$0xff]   ;;  %v3432_v44 = vld [vmem:[#allocation4 + $0x6a8] ss:$16 sps:$4 sm:$0xff]  }
 0x104   : > { %1942 = vmatpush1.bf16.msra.mxu0 %v3345_v45  ;;  %2114 = vmatpush1.bf16.msra.mxu1 %v3348_v46  ;;  %v3437_v45 = vld [vmem:[#allocation4 + $0x6c4] ss:$16 sps:$4 sm:$0xff]   ;;  %v3440_v46 = vld [vmem:[#allocation4 + $0x6cc] ss:$16 sps:$4 sm:$0xff]  }
 0x105   : > { %1943 = vmatprep.subr.bf16.mxu0 %v3353_v47  ;;  %2115 = vmatprep.subr.bf16.mxu1 %v3356_v48  ;;  %v3435_v47 = vld [vmem:[#allocation4 + $0x6c0] ss:$16 sps:$4 sm:$0xff]   ;;  %v3438_v48 = vld [vmem:[#allocation4 + $0x6c8] ss:$16 sps:$4 sm:$0xff]  }
 0x108   : > { %1944 = vmatpush1.bf16.msra.mxu0 %v3351_v49  ;;  %2116 = vmatpush1.bf16.msra.mxu1 %v3354_v50  ;;  %v3443_v49 = vld [vmem:[#allocation4 + $0x6e4] ss:$16 sps:$4 sm:$0xff]   ;;  %v3446_v50 = vld [vmem:[#allocation4 + $0x6ec] ss:$16 sps:$4 sm:$0xff]  }
 0x109   : > { %1945 = vmatprep.subr.bf16.mxu0 %v3359_v51  ;;  %2117 = vmatprep.subr.bf16.mxu1 %v3362_v52  ;;  %v3441_v51 = vld [vmem:[#allocation4 + $0x6e0] ss:$16 sps:$4 sm:$0xff]   ;;  %v3444_v52 = vld [vmem:[#allocation4 + $0x6e8] ss:$16 sps:$4 sm:$0xff]  }
 0x10c   : > { %1946 = vmatpush1.bf16.msra.mxu0 %v3357_v53  ;;  %2118 = vmatpush1.bf16.msra.mxu1 %v3360_v54  ;;  %v3449_v53 = vld [vmem:[#allocation4 + $0x704] ss:$16 sps:$4 sm:$0xff]   ;;  %v3452_v54 = vld [vmem:[#allocation4 + $0x70c] ss:$16 sps:$4 sm:$0xff]  }
 0x10d   : > { %1947 = vmatprep.subr.bf16.mxu0 %v3365_v55  ;;  %2119 = vmatprep.subr.bf16.mxu1 %v3368_v56  ;;  %v3447_v55 = vld [vmem:[#allocation4 + $0x700] ss:$16 sps:$4 sm:$0xff]   ;;  %v3450_v56 = vld [vmem:[#allocation4 + $0x708] ss:$16 sps:$4 sm:$0xff]  }
 0x110   : > { %1948 = vmatpush1.bf16.msra.mxu0 %v3363_v57  ;;  %2120 = vmatpush1.bf16.msra.mxu1 %v3366_v58  ;;  %v3455_v57 = vld [vmem:[#allocation4 + $0x724] ss:$16 sps:$4 sm:$0xff]   ;;  %v3458_v58 = vld [vmem:[#allocation4 + $0x72c] ss:$16 sps:$4 sm:$0xff]  }
 0x111   : > { %1949 = vmatprep.subr.bf16.mxu0 %v3371_v59  ;;  %2121 = vmatprep.subr.bf16.mxu1 %v3374_v60  ;;  %v3453_v59 = vld [vmem:[#allocation4 + $0x720] ss:$16 sps:$4 sm:$0xff]   ;;  %v3456_v60 = vld [vmem:[#allocation4 + $0x728] ss:$16 sps:$4 sm:$0xff]  }
 0x114   : > { %1950 = vmatpush1.bf16.msra.mxu0 %v3369_v61  ;;  %2122 = vmatpush1.bf16.msra.mxu1 %v3372_v62  ;;  %v3461_v61 = vld [vmem:[#allocation4 + $0x744] ss:$16 sps:$4 sm:$0xff]   ;;  %v3464_v62 = vld [vmem:[#allocation4 + $0x74c] ss:$16 sps:$4 sm:$0xff]  }
 0x115   : > { %1951 = vmatprep.subr.bf16.mxu0 %v3377_v63  ;;  %2123 = vmatprep.subr.bf16.mxu1 %v3380_v0  ;;  %v3459_v63 = vld [vmem:[#allocation4 + $0x740] ss:$16 sps:$4 sm:$0xff]   ;;  %v3462_v0 = vld [vmem:[#allocation4 + $0x748] ss:$16 sps:$4 sm:$0xff]  }
 0x118   : > { %1952 = vmatpush1.bf16.msra.mxu0 %v3375_v1  ;;  %2124 = vmatpush1.bf16.msra.mxu1 %v3378_v2  ;;  %v3467_v1 = vld [vmem:[#allocation4 + $0x764] ss:$16 sps:$4 sm:$0xff]   ;;  %v3470_v2 = vld [vmem:[#allocation4 + $0x76c] ss:$16 sps:$4 sm:$0xff]  }
 0x119   : > { %1953 = vmatprep.subr.bf16.mxu0 %v3383_v3  ;;  %2125 = vmatprep.subr.bf16.mxu1 %v3386_v4  ;;  %v3465_v3 = vld [vmem:[#allocation4 + $0x760] ss:$16 sps:$4 sm:$0xff]   ;;  %v3468_v4 = vld [vmem:[#allocation4 + $0x768] ss:$16 sps:$4 sm:$0xff]  }
 0x11c   : > { %1954 = vmatpush1.bf16.msra.mxu0 %v3381_v5  ;;  %2126 = vmatpush1.bf16.msra.mxu1 %v3384_v6  ;;  %v3473_v5 = vld [vmem:[#allocation4 + $0x784] ss:$16 sps:$4 sm:$0xff]   ;;  %v3476_v6 = vld [vmem:[#allocation4 + $0x78c] ss:$16 sps:$4 sm:$0xff]  }
 0x11d   : > { %1955 = vmatprep.subr.bf16.mxu0 %v3389_v7  ;;  %2127 = vmatprep.subr.bf16.mxu1 %v3392_v8  ;;  %v3471_v7 = vld [vmem:[#allocation4 + $0x780] ss:$16 sps:$4 sm:$0xff]   ;;  %v3474_v8 = vld [vmem:[#allocation4 + $0x788] ss:$16 sps:$4 sm:$0xff]  }
 0x120   : > { %1956 = vmatpush1.bf16.msra.mxu0 %v3387_v9  ;;  %2128 = vmatpush1.bf16.msra.mxu1 %v3390_v10  ;;  %v3479_v9 = vld [vmem:[#allocation4 + $0x7a4] ss:$16 sps:$4 sm:$0xff]   ;;  %v3482_v10 = vld [vmem:[#allocation4 + $0x7ac] ss:$16 sps:$4 sm:$0xff]  }
 0x121   : > { %1957 = vmatprep.subr.bf16.mxu0 %v3395_v11  ;;  %2129 = vmatprep.subr.bf16.mxu1 %v3398_v12  ;;  %v550_v11 = vld [vmem:[#allocation4 + $0x7c0] sm:$0xff]  ;;  %v551_v12 = vld [vmem:[#allocation4 + $0x7c8] sm:$0xff] }
 0x122   : > { %v2917_v16 = vcombine.high %v551_v12, %v551_v12  ;;  %v2914_v17 = vcombine.low %v550_v11, %v550_v11 }
 0x124   : > { %1958 = vmatpush1.bf16.msra.mxu0 %v3393_v13  ;;  %2130 = vmatpush1.bf16.msra.mxu1 %v3396_v14  ;;  %v3477_v13 = vld [vmem:[#allocation4 + $0x7a0] ss:$16 sps:$4 sm:$0xff]   ;;  %v3480_v14 = vld [vmem:[#allocation4 + $0x7a8] ss:$16 sps:$4 sm:$0xff]  }
 0x125   : > { %1970 = vmatprep.subr.bf16.mxu0 %v3401_v15  ;;  %2142 = vmatprep.subr.bf16.mxu1 %v3404_v18  ;;  %v2915_v15 = vcombine.high %v550_v11, %v550_v11  ;;  %v2916_v18 = vcombine.low %v551_v12, %v551_v12 }
 0x127   : > { %1960 = vmatmul.mubr.bf16.vlgmr.msra.gmra.mrb[0].mxu0 %v298_v21  ;;  %2132 = vmatmul.mubr.bf16.vlgmr.msra.gmra.mrb[0].mxu1 %v298_v21  ;;  %v1830_v21 = vsel %vm1828_vm1, %v2914_v17, 0  ;;  %v1836_v22 = vsel %vm1828_vm1, %v2916_v18, 0 }
 0x128   : > { %1971 = vmatpush1.bf16.msra.mxu0 %v3399_v19  ;;  %2143 = vmatpush1.bf16.msra.mxu1 %v3402_v23  ;;  %v284_v19 = vld [vmem:[%s3846_s15 + $0x30] sm:$0xff] }
 0x129   : > { %1972 = vmatprep.subr.bf16.mxu0 %v3407_v24  ;;  %2144 = vmatprep.subr.bf16.mxu1 %v3410_v25  ;;  %v3487_v23 = vld [vmem:[#allocation6 + $0x40] sm:$0xff]   ;;  %v300_v25 = vpack.c.bf16 %v292_v20, %v284_v19 }
 0x12a   : > { %2919 = vmatprep.mubr.msk.bf16.mxu0 %vm1824_vm0, %v301_v28  ;;  %2921 = vmatprep.mubr.msk.bf16.mxu1 %vm1824_vm0, %v301_v28  ;;  %v3488_v24 = vld [vmem:[#allocation6 + $0xc0] sm:$0xff]   ;;  %v3491_v28 = vld [vmem:[#allocation6 + $0x48] sm:$0xff]  }
 0x12c   : > { %1973 = vmatpush1.bf16.msra.mxu0 %v3405_v26  ;;  %2145 = vmatpush1.bf16.msra.mxu1 %v3408_v27  ;;  %v3489_v26 = vld [vmem:[#allocation6] sm:$0xff]  }
 0x12d   : > { %1974 = vmatprep.subr.bf16.mxu0 %v3413_v29  ;;  %2146 = vmatprep.subr.bf16.mxu1 %v3416_v30  ;;  %v3490_v27 = vld [vmem:[#allocation6 + $0x80] sm:$0xff]   ;;  %v3492_v29 = vld [vmem:[#allocation6 + $0xc8] sm:$0xff]  }
 0x12e   : > { %v3493_v30 = vld [vmem:[#allocation6 + $0x8] sm:$0xff]  }
 0x130   : > { %1975 = vmatpush1.bf16.msra.mxu0 %v3411_v31  ;;  %2147 = vmatpush1.bf16.msra.mxu1 %v3414_v32  ;;  %v3494_v31 = vld [vmem:[#allocation6 + $0x88] sm:$0xff]   ;;  %v3495_v32 = vld [vmem:[#allocation6 + $0x50] sm:$0xff]  }
 0x131   : > { %1976 = vmatprep.subr.bf16.mxu0 %v3419_v33  ;;  %2148 = vmatprep.subr.bf16.mxu1 %v3422_v34  ;;  %v3496_v33 = vld [vmem:[#allocation6 + $0xd0] sm:$0xff]  }
 0x132   : > { %v3497_v34 = vld [vmem:[#allocation6 + $0x10] sm:$0xff]  }
 0x134   : > { %1977 = vmatpush1.bf16.msra.mxu0 %v3417_v35  ;;  %2149 = vmatpush1.bf16.msra.mxu1 %v3420_v36  ;;  %v3498_v35 = vld [vmem:[#allocation6 + $0x90] sm:$0xff]   ;;  %v3499_v36 = vld [vmem:[#allocation6 + $0x58] sm:$0xff]  }
 0x135   : > { %1978 = vmatprep.subr.bf16.mxu0 %v3425_v37  ;;  %2150 = vmatprep.subr.bf16.mxu1 %v3428_v38  ;;  %v3500_v37 = vld [vmem:[#allocation6 + $0xd8] sm:$0xff]  }
 0x136   : > { %v3501_v38 = vld [vmem:[#allocation6 + $0x18] sm:$0xff]  }
 0x138   : > { %1979 = vmatpush1.bf16.msra.mxu0 %v3423_v39  ;;  %2151 = vmatpush1.bf16.msra.mxu1 %v3426_v40  ;;  %v3502_v39 = vld [vmem:[#allocation6 + $0x98] sm:$0xff]   ;;  %v3503_v40 = vld [vmem:[#allocation6 + $0x60] sm:$0xff]  }
 0x139   : > { %1980 = vmatprep.subr.bf16.mxu0 %v3431_v41  ;;  %2152 = vmatprep.subr.bf16.mxu1 %v3434_v42  ;;  %v3504_v41 = vld [vmem:[#allocation6 + $0xe0] sm:$0xff]  }
 0x13a   : > { %v3505_v42 = vld [vmem:[#allocation6 + $0x20] sm:$0xff]  }
 0x13c   : > { %1981 = vmatpush1.bf16.msra.mxu0 %v3429_v43  ;;  %2153 = vmatpush1.bf16.msra.mxu1 %v3432_v44  ;;  %v3506_v43 = vld [vmem:[#allocation6 + $0xa0] sm:$0xff]   ;;  %v3507_v44 = vld [vmem:[#allocation6 + $0x68] sm:$0xff]  }
 0x13d   : > { %1982 = vmatprep.subr.bf16.mxu0 %v3437_v45  ;;  %2154 = vmatprep.subr.bf16.mxu1 %v3440_v46  ;;  %v3508_v45 = vld [vmem:[#allocation6 + $0xe8] sm:$0xff]  }
 0x13e   : > { %v3509_v46 = vld [vmem:[#allocation6 + $0x28] sm:$0xff]  }
 0x140   : > { %1983 = vmatpush1.bf16.msra.mxu0 %v3435_v47  ;;  %2155 = vmatpush1.bf16.msra.mxu1 %v3438_v48  ;;  %v3510_v47 = vld [vmem:[#allocation6 + $0xa8] sm:$0xff]   ;;  %v3511_v48 = vld [vmem:[#allocation6 + $0x70] sm:$0xff]  }
 0x141   : > { %1984 = vmatprep.subr.bf16.mxu0 %v3443_v49  ;;  %2156 = vmatprep.subr.bf16.mxu1 %v3446_v50  ;;  %v3512_v49 = vld [vmem:[#allocation6 + $0xf0] sm:$0xff]  }
 0x142   : > { %v3513_v50 = vld [vmem:[#allocation6 + $0x30] sm:$0xff]  }
 0x144   : > { %1985 = vmatpush1.bf16.msra.mxu0 %v3441_v51  ;;  %2157 = vmatpush1.bf16.msra.mxu1 %v3444_v52  ;;  %v3514_v51 = vld [vmem:[#allocation6 + $0xb0] sm:$0xff]   ;;  %v3515_v52 = vld [vmem:[#allocation6 + $0x78] sm:$0xff]  }
 0x145   : > { %1986 = vmatprep.subr.bf16.mxu0 %v3449_v53  ;;  %2158 = vmatprep.subr.bf16.mxu1 %v3452_v54  ;;  %v3516_v53 = vld [vmem:[#allocation6 + $0xf8] sm:$0xff]  }
 0x146   : > { %v3517_v54 = vld [vmem:[#allocation6 + $0x38] sm:$0xff]  }
 0x148   : > { %1987 = vmatpush1.bf16.msra.mxu0 %v3447_v55  ;;  %2159 = vmatpush1.bf16.msra.mxu1 %v3450_v56  ;;  %v3518_v55 = vld [vmem:[#allocation6 + $0xb8] sm:$0xff]   ;;  %v554_v56 = vlaneseq }
 0x149   : > { %1988 = vmatprep.subr.bf16.mxu0 %v3455_v57  ;;  %2160 = vmatprep.subr.bf16.mxu1 %v3458_v58 }
 0x14a   : > { %v555_v57 = vshrl.u32 %v554_v56, 7 }
 0x14c   : > { %1989 = vmatpush1.bf16.msra.mxu0 %v3453_v59  ;;  %2161 = vmatpush1.bf16.msra.mxu1 %v3456_v60  ;;  %v556_v58 = vsub.s32 0, %v555_v57  ;;  %v564_v59 = vsub.s32 2, %v555_v57  ;;  %v552_v60 = vld [vmem:[%s3900_s2] sm:$0xf] }
 0x14d   : > { %1990 = vmatprep.subr.bf16.mxu0 %v3461_v61  ;;  %2162 = vmatprep.subr.bf16.mxu1 %v3464_v62  ;;  %v560_v61 = vsub.s32 1, %v555_v57  ;;  %v568_v62 = vsub.s32 3, %v555_v57 }
 0x150   : > { %1991 = vmatpush1.bf16.msra.mxu0 %v3459_v63  ;;  %2163 = vmatpush1.bf16.msra.mxu1 %v3462_v0  ;;  %v557_v63 = vrot.slane %v552_v60, %v556_v58  ;;  %v565_v0 = vrot.slane %v552_v60, %v564_v59 }
 0x151   : > { %1992 = vmatprep.subr.bf16.mxu0 %v3467_v1  ;;  %2164 = vmatprep.subr.bf16.mxu1 %v3470_v2  ;;  %v561_v1 = vrot.slane %v552_v60, %v560_v61  ;;  %v569_v2 = vrot.slane %v552_v60, %v568_v62 }
 0x154   : > { %1993 = vmatpush1.bf16.msra.mxu0 %v3465_v3  ;;  %2165 = vmatpush1.bf16.msra.mxu1 %v3468_v4 }
 0x155   : > { %1994 = vmatprep.subr.bf16.mxu0 %v3473_v5  ;;  %2166 = vmatprep.subr.bf16.mxu1 %v3476_v6 }
 0x158   : > { %1995 = vmatpush1.bf16.msra.mxu0 %v3471_v7  ;;  %2167 = vmatpush1.bf16.msra.mxu1 %v3474_v8 }
 0x159   : > { %1996 = vmatprep.subr.bf16.mxu0 %v3479_v9  ;;  %2168 = vmatprep.subr.bf16.mxu1 %v3482_v10 }
 0x15c   : > { %1997 = vmatpush1.bf16.msra.mxu0 %v3477_v13  ;;  %2169 = vmatpush1.bf16.msra.mxu1 %v3480_v14 }
 0x15d   : > { %2918 = vmatprep.subr.msk.bf16.mxu0 %vm1828_vm1, %v2915_v15  ;;  %2920 = vmatprep.subr.msk.bf16.mxu1 %vm1828_vm1, %v2917_v16 }
 0x160   : > { %1999 = vmatpush1.bf16.msra.mxu0 %v1830_v21  ;;  %2171 = vmatpush1.bf16.msra.mxu1 %v1836_v22 }
 0x161   : > { %2970 = vmatprep.subr.bf16.mxu0 %v3487_v23  ;;  %2992 = vmatprep.subr.bf16.mxu1 %v3488_v24 }
 0x163   : > { %2003 = vmatmul.mubr.bf16.vlgmr.msra.gmra.mrb[0].mxu0 %v300_v25  ;;  %2175 = vmatmul.mubr.bf16.vlgmr.msra.gmra.mrb[0].mxu1 %v300_v25 }
 0x164   : > { %2971 = vmatpush3.bf16.msra.mxu0 %v3489_v26  ;;  %2993 = vmatpush3.bf16.msra.mxu1 %v3490_v27 }
 0x165   : > { %2972 = vmatprep.subr.bf16.mxu0 %v3491_v28  ;;  %2994 = vmatprep.subr.bf16.mxu1 %v3492_v29 }
 0x168   : > { %2973 = vmatpush3.bf16.msra.mxu0 %v3493_v30  ;;  %2995 = vmatpush3.bf16.msra.mxu1 %v3494_v31 }
 0x169   : > { %2974 = vmatprep.subr.bf16.mxu0 %v3495_v32  ;;  %2996 = vmatprep.subr.bf16.mxu1 %v3496_v33  ;;  %v2922_v33 = vld [vmem:[%s3902_s4] ss:$0 sm:$0xff] }
 0x16c   : > { %2975 = vmatpush3.bf16.msra.mxu0 %v3497_v34  ;;  %2997 = vmatpush3.bf16.msra.mxu1 %v3498_v35 }
 0x16d   : > { %2976 = vmatprep.subr.bf16.mxu0 %v3499_v36  ;;  %2998 = vmatprep.subr.bf16.mxu1 %v3500_v37 }
 0x170   : > { %2977 = vmatpush3.bf16.msra.mxu0 %v3501_v38  ;;  %2999 = vmatpush3.bf16.msra.mxu1 %v3502_v39 }
 0x171   : > { %2978 = vmatprep.subr.bf16.mxu0 %v3503_v40  ;;  %3000 = vmatprep.subr.bf16.mxu1 %v3504_v41 }
 0x174   : > { %2979 = vmatpush3.bf16.msra.mxu0 %v3505_v42  ;;  %3001 = vmatpush3.bf16.msra.mxu1 %v3506_v43 }
 0x175   : > { %2980 = vmatprep.subr.bf16.mxu0 %v3507_v44  ;;  %3002 = vmatprep.subr.bf16.mxu1 %v3508_v45 }
 0x178   : > { %2981 = vmatpush3.bf16.msra.mxu0 %v3509_v46  ;;  %3003 = vmatpush3.bf16.msra.mxu1 %v3510_v47 }
 0x179   : > { %2982 = vmatprep.subr.bf16.mxu0 %v3511_v48  ;;  %3004 = vmatprep.subr.bf16.mxu1 %v3512_v49 }
 0x17c   : > { %2983 = vmatpush3.bf16.msra.mxu0 %v3513_v50  ;;  %3005 = vmatpush3.bf16.msra.mxu1 %v3514_v51 }
 0x17d   : > { %2984 = vmatprep.subr.bf16.mxu0 %v3515_v52  ;;  %3006 = vmatprep.subr.bf16.mxu1 %v3516_v53 }
 0x180   : > { %2985 = vmatpush3.bf16.msra.mxu0 %v3517_v54  ;;  %3007 = vmatpush3.bf16.msra.mxu1 %v3518_v55 }
 0x236   : > { %v2004_v3 = vpop.f32.mrb[0].mxu0  ;;  %v2176_v4 = vpop.f32.mrb[0].mxu1 }
 0x237   : > { %v3014_v5 = vadd.f32 %v2004_v3, %v557_v63  ;;  %v3018_v6 = vadd.f32 %v2176_v4, %v565_v0  ;;  %v2006_v7 = vpop.f32.mrb[1].mxu0  ;;  %v2178_v8 = vpop.f32.mrb[1].mxu1 }
 0x238   : > { %v3015_v9 = vadd.f32 %v2006_v7, %v561_v1  ;;  %v3019_v10 = vadd.f32 %v2178_v8, %v569_v2  ;;  %v2008_v11 = vpop.f32.mrb[2].mxu0  ;;  %v2180_v12 = vpop.f32.mrb[2].mxu1 }
 0x239   : > { %v3016_v13 = vadd.f32 %v2008_v11, %v557_v63  ;;  %v3020_v14 = vadd.f32 %v2180_v12, %v565_v0  ;;  %v2010_v15 = vpop.f32.mrb[3].mxu0  ;;  %v2182_v16 = vpop.f32.mrb[3].mxu1  ;;  %v2185_v19 = vmax.f32 %v3014_v5, 0.0  ;;  %v2187_v20 = vmax.f32 %v3018_v6, 0.0 }
 0x23a   : > { %v3017_v17 = vadd.f32 %v2010_v15, %v561_v1  ;;  %v3021_v18 = vadd.f32 %v2182_v16, %v569_v2  ;;  %v2186_v23 = vmax.f32 %v3015_v9, 0.0  ;;  %v2188_v24 = vmax.f32 %v3019_v10, 0.0 }
 0x23b   : > { %v2189_v21 = vmax.f32 %v3016_v13, 0.0  ;;  %v2191_v22 = vmax.f32 %v3020_v14, 0.0 }
 0x23c   : > { %v2190_v25 = vmax.f32 %v3017_v17, 0.0  ;;  %v2192_v26 = vmax.f32 %v3021_v18, 0.0 }
 0x23d   : > { %v2193_v27 = vpack.c.bf16 %v2189_v21, %v2185_v19  ;;  %v2195_v28 = vpack.c.bf16 %v2191_v22, %v2187_v20 }
 0x23e   : > { %v2194_v29 = vpack.c.bf16 %v2190_v25, %v2186_v23  ;;  %v2196_v30 = vpack.c.bf16 %v2192_v26, %v2188_v24 }
 0x240   : > { %2492 = vmatprep.mubr.bf16.mxu0 %v2194_v29  ;;  %2533 = vmatprep.mubr.bf16.mxu1 %v2196_v30 }
 0x241   : > { %2493 = vmatmul.mubr.bf16.vlgmr.msra.gmra.mrb[4].mxu0 %v2193_v27  ;;  %2534 = vmatmul.mubr.bf16.vlgmr.msra.gmra.mrb[4].mxu1 %v2195_v28 }
 0x314   : > { %v2986_v31 = vpop.f32.mrb[4].mxu0  ;;  %v3008_v32 = vpop.f32.mrb[4].mxu1 }
 0x315   : > { %v2987_v34 = vpop.f32.mrb[5].mxu0  ;;  %v3009_v35 = vpop.f32.mrb[5].mxu1 }
 0x316   : > { %v2988_v36 = vadd.f32 %v2987_v34, %v2986_v31  ;;  %v3010_v37 = vadd.f32 %v3009_v35, %v3008_v32  ;;  %v2989_v38 = vpop.f32.mrb[6].mxu0  ;;  %v3011_v39 = vpop.f32.mrb[6].mxu1 }
 0x317   : > { %v2990_v40 = vpop.f32.mrb[7].mxu0  ;;  %v3012_v41 = vpop.f32.mrb[7].mxu1 }
 0x318   : > { %v2495_v42 = vadd.f32 %v2988_v36, %v2922_v33  ;;  %v2991_v43 = vadd.f32 %v2990_v40, %v2989_v38  ;;  %v3013_v44 = vadd.f32 %v3012_v41, %v3011_v39 }
 0x31a   : > { %v2536_v45 = vadd.f32 %v3010_v37, %v2495_v42  ;;  %v2498_v46 = vadd.f32 %v2991_v43, %v2922_v33 }
 0x31c   : > { %v2955_v47 = vmul.f32 -1.442695, %v2536_v45  ;;  %v2539_v48 = vadd.f32 %v3013_v44, %v2498_v46 }
 0x31e   : > { %3519 = vpow2.f32 %v2955_v47  ;;  %v2956_v49 = vmul.f32 -1.442695, %v2539_v48 }
 0x320   : > { %3521 = vpow2.f32 %v2956_v49 }
 0x328   : > { %v3520_v50 = vpop.eup %3519 }
 0x329   : > { %v2548_v51 = vadd.f32 1.0, %v3520_v50 }
 0x32a   : > { %v3522_v52 = vpop.eup %3521 }
 0x32b   : > { %v2549_v53 = vadd.f32 1.0, %v3522_v52  ;;  %3523 = vrcp.f32 %v2548_v51 }
 0x32d   : > { %3525 = vrcp.f32 %v2549_v53 }
 0x335   : > { %v3524_v54 = vpop.eup %3523 }
 0x337   : > { %v3526_v55 = vpop.eup %3525 }
 0x338   : > { %v2968_v56 = vpack.c.bf16 %v3526_v55, %v3524_v54 }
 0x33a   : > { %2969 = vst [vmem:[%s275_s16] sm:$0xff] %v2968_v56  }
 0x33b PF: > { %p16_p6 = scmp.ge.s32.totalorder %s3789_s14, 6   ;;  %s3916_s18 = smov %s3643_s19 }
 0x33c   : > { %s3917_s19 = smov %s3647_s20  ;;  %s3918_s20 = smov %s3798_s17 }
 0x33d   : > { %s3919_s21 = smov %s3789_s14  ;;  %18 = sbr.rel (!%p16_p6) target bundleno = 4 (0x4), region = 88 }
 0x344   :  { %2586 = vsyncpa [#allocation3], 1 }
 0x345   :  { %2588 = vsyncpa [#allocation3 + $0x1], 1 }
 0x346   :  { %2589 = vsyncpa [#allocation5], 1 }

</bundles_post_ra>
